<compile_context>
chip_gen: v6e
topology: v6e:2x2x1
jax: 0.10.0
libtpu: 0.0.40
codegen_flags: <defaults>
</compile_context>

<pallas_src>
import functools

import jax
import jax.numpy as jnp
from jax import lax
from jax.experimental import pallas as pl
from jax.experimental.pallas import tpu as pltpu


def _tcn_kernel(x_ref, w_ref, shift_ref, o_ref, *,
                K, dilation, stride, Vp, TT, use_im2col):
    """One (batch n, T-tile j) grid step.

    x_ref:     (stride, (TT + qmax) * Vp, Cin)  halo'd input window, polyphase over stride,
                                                with (T, Vp) flattened into rows
    w_ref:     (K*Cin, Cout_pad)  [im2col]  or  (K, Cin, Cout_pad)  [tap-accumulate]
               BN scale is already folded into the weights.
    shift_ref: (1, Cout_pad)                    beta + scale * (conv_bias - mean)
    o_ref:     (TT * Vp, Cout_pad)
    """
    def tap(k):
        off = k * dilation
        phase, q = off % stride, off // stride           # static Python ints
        return x_ref[phase, q * Vp:(q + TT) * Vp, :]     # (TT*Vp, Cin), sublane-aligned

    if use_im2col:
        # Small-Cin path: one full-contraction MXU matmul over the K taps.
        lhs = tap(0) if K == 1 else jnp.concatenate([tap(k) for k in range(K)], axis=1)
        acc = jnp.dot(lhs, w_ref[...], preferred_element_type=jnp.float32)
    else:
        # Large-Cin path: unrolled per-tap MXU accumulation, no im2col temp in VMEM.
        acc = jnp.dot(tap(0), w_ref[0], preferred_element_type=jnp.float32)
        for k in range(1, K):
            acc = acc + jnp.dot(tap(k), w_ref[k], preferred_element_type=jnp.float32)

    # Epilogue: only the folded BN/bias shift remains (scale lives in the weights).
    o_ref[...] = (acc + shift_ref[0]).astype(o_ref.dtype)


def _default_vmem_limit():
    cap = 128 * 1024 * 1024
    try:
        info = pltpu.get_tpu_info()
        cap = int(getattr(info, "vmem_capacity_bytes", cap))
    except Exception:
        pass
    # Leave headroom: <= 3/4 of physical VMEM, clamped to [32, 96] MiB
    # (v7x: 64 MiB physical -> 48 MiB; v5e/v6e: 128 MiB -> 96 MiB).
    return int(min(96 * 1024 * 1024, max(32 * 1024 * 1024, (cap * 3) // 4)))


def unit_tcn_forward(x_nchw, conv_w, conv_b, bn_gamma, bn_beta, bn_mean, bn_var, *,
                     kernel_size=9, stride=1, dilation=1, eps=1e-5,
                     tile_t=None, compute_dtype=jnp.bfloat16, out_dtype=None,
                     vmem_limit_bytes=None):
    """Pallas implementation of unit_tcn.forward (eval mode).

    x_nchw : (N, C_in, T, V)   conv_w : (C_out, C_in, K, 1)   conv_b : (C_out,)
    returns: (N, C_out, T_out, V)
    """
    N, Cin, T, V = x_nchw.shape
    Cout = conv_w.shape[0]
    K, s, d = kernel_size, stride, dilation
    out_dtype = x_nchw.dtype if out_dtype is None else out_dtype

    pad = (K + (K - 1) * (d - 1) - 1) // 2
    t_out = (T + 2 * pad - d * (K - 1) - 1) // s + 1
    qmax = ((K - 1) * d) // s                 # tap reach in polyphase rows (= T halo)

    # ---- alignment padding -----------------------------------------------------------
    Vp = -(-V // 8) * 8                       # joints padded to sublane multiple
    Cout_pad = -(-Cout // 128) * 128          # output channels padded to lane multiple
    use_im2col = Cin < 128                    # concat lhs only for small-Cin layers

    ib = jnp.dtype(compute_dtype).itemsize
    ob = jnp.dtype(out_dtype).itemsize

    # ---- output-T tiling (auto-sized from a VMEM working-set budget) ------------------
    if tile_t is None:
        budget = 24 * 1024 * 1024
        per_t = Vp * (2 * s * Cin * ib                       # input window, double-buffered
                      + Cout_pad * (2 * ob + 4)              # output (x2) + f32 acc
                      + (K * Cin * ib if use_im2col else 0)) # im2col temp, if used
        fixed = 2 * K * Cin * Cout_pad * ib + 2 * s * qmax * Vp * Cin * ib
        tt_cap = (budget - fixed) // max(per_t, 1)
        TT = max(8, min(-(-t_out // 8) * 8, (tt_cap // 8) * 8))
    else:
        TT = max(8, (min(tile_t, t_out) // 8) * 8)
    nt = -(-t_out // TT)
    t_out_pad = TT * nt
    # TODO(synk): for v7x small-batch inference (N*nt < 2) shrink TT or split Cout so
    #             both TensorCores get work.

    L = t_out_pad + qmax                      # rows needed per polyphase component
    win_t = TT + qmax
    win_rows = win_t * Vp

    # ---- host preprocessing: NCHW->NTVC, cast, pad (T, V), polyphase, halo windows ----
    # TODO(synk): if the surrounding model kept activations channels-last (NTVC), the
    #             boundary transposes would disappear and this reduces to pad + window.
    x_ntvc = jnp.transpose(x_nchw, (0, 2, 3, 1)).astype(compute_dtype)     # (N, T, V, Cin)
    right = max(0, s * L - T - pad)
    x_big = jnp.pad(x_ntvc, ((0, 0), (pad, right), (0, Vp - V), (0, 0)))   # (N, Tp, Vp, Cin)
    if s == 1:
        x_ph = x_big[:, None, :L]                                          # (N, 1, L, Vp, Cin)
    else:
        # polyphase split: component p holds padded-T rows p, p+s, p+2s, ...
        x_ph = jnp.stack([x_big[:, p::s][:, :L] for p in range(s)], axis=1)
    if nt == 1:
        x_win = x_ph.reshape(N, 1, s, win_rows, Cin)
    else:
        x_win = jnp.stack([x_ph[:, :, j * TT:j * TT + win_t] for j in range(nt)], axis=1)
        x_win = x_win.reshape(N, nt, s, win_rows, Cin)                     # (N, nt, s, rows, Cin)

    # ---- fold eval-mode BN into weights (scale) and a per-channel shift ----------------
    scale = (bn_gamma / jnp.sqrt(bn_var + eps)).astype(jnp.float32)        # (Cout,)
    shift = (bn_beta + scale * (conv_b - bn_mean)).astype(jnp.float32)     # (Cout,)

    w_f32 = conv_w[:, :, :, 0].astype(jnp.float32) * scale[:, None, None]  # (Cout, Cin, K)
    w_kic = jnp.transpose(w_f32, (2, 1, 0))                                # (K, Cin, Cout)
    w_kic = jnp.pad(w_kic, ((0, 0), (0, 0), (0, Cout_pad - Cout)))
    if use_im2col:
        w_op = w_kic.reshape(K * Cin, Cout_pad).astype(compute_dtype)
        w_spec = pl.BlockSpec((K * Cin, Cout_pad), lambda n, j: (0, 0))
    else:
        w_op = w_kic.astype(compute_dtype)
        w_spec = pl.BlockSpec((K, Cin, Cout_pad), lambda n, j: (0, 0, 0))

    shift_op = jnp.pad(shift, (0, Cout_pad - Cout)).reshape(1, Cout_pad)   # f32

    kernel = functools.partial(_tcn_kernel, K=K, dilation=d, stride=s,
                               Vp=Vp, TT=TT, use_im2col=use_im2col)

    if vmem_limit_bytes is None:
        vmem_limit_bytes = _default_vmem_limit()

    flops = 2 * N * t_out_pad * Vp * K * Cin * Cout_pad
    bytes_accessed = (x_win.size * ib + w_op.size * ib + shift_op.size * 4
                      + N * t_out_pad * Vp * Cout_pad * ob)

    out_flat = pl.pallas_call(
        kernel,
        out_shape=jax.ShapeDtypeStruct((N, t_out_pad * Vp, Cout_pad), out_dtype),
        grid_spec=pltpu.PrefetchScalarGridSpec(
            num_scalar_prefetch=0,
            grid=(N, nt),
            in_specs=[
                pl.BlockSpec((None, None, s, win_rows, Cin),
                             lambda n, j: (n, j, 0, 0, 0)),
                w_spec,
                pl.BlockSpec((1, Cout_pad), lambda n, j: (0, 0)),
            ],
            out_specs=pl.BlockSpec((None, TT * Vp, Cout_pad), lambda n, j: (n, j, 0)),
        ),
        compiler_params=pltpu.CompilerParams(
            dimension_semantics=("parallel", "parallel"),
            vmem_limit_bytes=int(vmem_limit_bytes),
        ),
        cost_estimate=pl.CostEstimate(flops=int(flops), transcendentals=0,
                                      bytes_accessed=int(bytes_accessed)),
    )(x_win, w_op, shift_op)

    # Dropout: identity in eval mode.
    # TODO(synk): training-mode BatchNorm (batch statistics) and Dropout masking are not implemented.
    out = out_flat.reshape(N, t_out_pad, Vp, Cout_pad)[:, :t_out, :V, :Cout]
    return jnp.transpose(out, (0, 3, 1, 2))                                # (N, Cout, T_out, V)


def _reference(x_nchw, conv_w, conv_b, bn_gamma, bn_beta, bn_mean, bn_var, *,
               kernel_size=9, stride=1, dilation=1, eps=1e-5,
               compute_dtype=jnp.float32):
    """Eval-mode bn(conv(x)+bias), with operands quantized exactly like the kernel
    (BN scale folded into the weights BEFORE the compute_dtype cast)."""
    K = kernel_size
    pad = (K + (K - 1) * (dilation - 1) - 1) // 2
    scale = bn_gamma / jnp.sqrt(bn_var + eps)
    shift = bn_beta + scale * (conv_b - bn_mean)
    w_fold = conv_w.astype(jnp.float32) * scale[:, None, None, None]
    xq = x_nchw.astype(compute_dtype).astype(jnp.float32)
    wq = w_fold.astype(compute_dtype).astype(jnp.float32)
    y = lax.conv_general_dilated(
        xq, wq, window_strides=(stride, 1), padding=((pad, pad), (0, 0)),
        rhs_dilation=(dilation, 1), dimension_numbers=('NCHW', 'OIHW', 'NCHW'))
    return y + shift.reshape(1, -1, 1, 1)


if __name__ == "__main__":
    base_key = jax.random.PRNGKey(0)

    def run_case(seed, name, *, N, Cin, Cout, T, V, K=9, stride=1, dilation=1,
                 tile_t=None, compute_dtype=jnp.float32, tol=1e-3):
        key = jax.random.fold_in(base_key, seed)
        k0, k1, k2, k3, k4, k5, k6 = jax.random.split(key, 7)
        x = jax.random.normal(k0, (N, Cin, T, V), jnp.float32)
        conv_w = 0.1 * jax.random.normal(k1, (Cout, Cin, K, 1), jnp.float32)
        conv_b = 0.05 * jax.random.normal(k2, (Cout,), jnp.float32)
        gamma = 1.0 + 0.1 * jax.random.normal(k3, (Cout,), jnp.float32)
        beta = 0.1 * jax.random.normal(k4, (Cout,), jnp.float32)
        mean = 0.1 * jax.random.normal(k5, (Cout,), jnp.float32)
        var = 1.0 + 0.1 * jnp.abs(jax.random.normal(k6, (Cout,), jnp.float32))

        out = unit_tcn_forward(x, conv_w, conv_b, gamma, beta, mean, var,
                               kernel_size=K, stride=stride, dilation=dilation,
                               tile_t=tile_t, compute_dtype=compute_dtype)
        out = jax.block_until_ready(out)

        ref = _reference(x, conv_w, conv_b, gamma, beta, mean, var,
                         kernel_size=K, stride=stride, dilation=dilation,
                         compute_dtype=compute_dtype)

        pad = (K + (K - 1) * (dilation - 1) - 1) // 2
        t_out = (T + 2 * pad - dilation * (K - 1) - 1) // stride + 1
        assert out.shape == (N, Cout, t_out, V), (name, out.shape)
        err = float(jnp.max(jnp.abs(out.astype(jnp.float32) - ref)))
        assert err < tol, (name, err)

    # primary small config (matches the module defaults): N=2, C_in=4, C_out=8, T=16, V=16, K=9
    run_case(0, "base",              N=2, Cin=4, Cout=8,  T=16, V=16)
    # multi-tile T with non-divisible t_out (exercises halo windows + output padding slice)
    run_case(1, "t_tiled_nondiv",    N=2, Cin=4, Cout=8,  T=20, V=16, tile_t=8)
    # strided conv (polyphase path), also T-tiled
    run_case(2, "stride2",           N=2, Cin=4, Cout=8,  T=32, V=16, stride=2, tile_t=8)
    # dilated conv, T-tiled
    run_case(3, "dilation2",         N=2, Cin=4, Cout=8,  T=16, V=16, dilation=2, tile_t=8)
    # stride + dilation combined
    run_case(4, "stride2_dilation2", N=2, Cin=4, Cout=8,  T=16, V=16, stride=2, dilation=2)
    # skeleton-like shape: V=25 joints (odd -> V padding path), Cin=3
    run_case(5, "skeleton_like",     N=2, Cin=3, Cout=16, T=24, V=25, tile_t=8)
    # wide channels: exercises the no-im2col per-tap MXU-accumulate path (Cin >= 128)
    run_case(6, "wide_channels",     N=1, Cin=128, Cout=128, T=16, V=16, tol=5e-2)
    # bf16 MXU operands (default production mode), f32 accumulation
    run_case(7, "bf16_compute",      N=2, Cin=4, Cout=8,  T=16, V=16,
             compute_dtype=jnp.bfloat16, tol=2e-2)

    print("KERNEL_OK")
</pallas_src>

<mosaic_0001>
module attributes {stable_mosaic.version = 11 : i64} {
  func.func @_tcn_kernel(%arg0: i32, %arg1: i32, %arg2: memref<1x1x1x384x4xf32, #tpu.memory_space<vmem>>, %arg3: memref<36x128xf32, #tpu.memory_space<vmem>>, %arg4: memref<1x128xf32, #tpu.memory_space<vmem>>, %arg5: memref<1x256x128xf32, #tpu.memory_space<vmem>>) attributes {dimension_semantics = [#tpu.dimension_semantics<parallel>, #tpu.dimension_semantics<parallel>], iteration_bounds = array<i64: 2, 1>, scalar_prefetch = 0 : i64, scratch_operands = 0 : i64, tpu.core_type = #tpu.core_type<tc>, window_params = [{transform_indices = @transform_0, window_bounds = array<i64: 1, 1, 1, 384, 4>}, {pipeline_mode = #tpu.pipeline_mode<synchronous>, transform_indices = @transform_1, window_bounds = array<i64: 36, 128>}, {pipeline_mode = #tpu.pipeline_mode<synchronous>, transform_indices = @transform_2, window_bounds = array<i64: 1, 128>}, {transform_indices = @transform_3, window_bounds = array<i64: 1, 256, 128>}]} {
    %c0 = arith.constant 0 : index
    %c0_0 = arith.constant 0 : index
    %c0_1 = arith.constant 0 : index
    %c0_2 = arith.constant 0 : index
    %c0_3 = arith.constant 0 : index
    %0 = vector.load %arg2[%c0, %c0_0, %c0_1, %c0_2, %c0_3] : memref<1x1x1x384x4xf32, #tpu.memory_space<vmem>>, vector<1x1x1x256x4xf32>
    %1 = vector.shape_cast %0 : vector<1x1x1x256x4xf32> to vector<256x4xf32>
    %c0_4 = arith.constant 0 : index
    %c0_5 = arith.constant 0 : index
    %c0_6 = arith.constant 0 : index
    %c16 = arith.constant 16 : index
    %c0_7 = arith.constant 0 : index
    %2 = vector.load %arg2[%c0_4, %c0_5, %c0_6, %c16, %c0_7] : memref<1x1x1x384x4xf32, #tpu.memory_space<vmem>>, vector<1x1x1x256x4xf32>
    %3 = vector.shape_cast %2 : vector<1x1x1x256x4xf32> to vector<256x4xf32>
    %c0_8 = arith.constant 0 : index
    %c0_9 = arith.constant 0 : index
    %c0_10 = arith.constant 0 : index
    %c32 = arith.constant 32 : index
    %c0_11 = arith.constant 0 : index
    %4 = vector.load %arg2[%c0_8, %c0_9, %c0_10, %c32, %c0_11] : memref<1x1x1x384x4xf32, #tpu.memory_space<vmem>>, vector<1x1x1x256x4xf32>
    %5 = vector.shape_cast %4 : vector<1x1x1x256x4xf32> to vector<256x4xf32>
    %c0_12 = arith.constant 0 : index
    %c0_13 = arith.constant 0 : index
    %c0_14 = arith.constant 0 : index
    %c48 = arith.constant 48 : index
    %c0_15 = arith.constant 0 : index
    %6 = vector.load %arg2[%c0_12, %c0_13, %c0_14, %c48, %c0_15] : memref<1x1x1x384x4xf32, #tpu.memory_space<vmem>>, vector<1x1x1x256x4xf32>
    %7 = vector.shape_cast %6 : vector<1x1x1x256x4xf32> to vector<256x4xf32>
    %c0_16 = arith.constant 0 : index
    %c0_17 = arith.constant 0 : index
    %c0_18 = arith.constant 0 : index
    %c64 = arith.constant 64 : index
    %c0_19 = arith.constant 0 : index
    %8 = vector.load %arg2[%c0_16, %c0_17, %c0_18, %c64, %c0_19] : memref<1x1x1x384x4xf32, #tpu.memory_space<vmem>>, vector<1x1x1x256x4xf32>
    %9 = vector.shape_cast %8 : vector<1x1x1x256x4xf32> to vector<256x4xf32>
    %c0_20 = arith.constant 0 : index
    %c0_21 = arith.constant 0 : index
    %c0_22 = arith.constant 0 : index
    %c80 = arith.constant 80 : index
    %c0_23 = arith.constant 0 : index
    %10 = vector.load %arg2[%c0_20, %c0_21, %c0_22, %c80, %c0_23] : memref<1x1x1x384x4xf32, #tpu.memory_space<vmem>>, vector<1x1x1x256x4xf32>
    %11 = vector.shape_cast %10 : vector<1x1x1x256x4xf32> to vector<256x4xf32>
    %c0_24 = arith.constant 0 : index
    %c0_25 = arith.constant 0 : index
    %c0_26 = arith.constant 0 : index
    %c96 = arith.constant 96 : index
    %c0_27 = arith.constant 0 : index
    %12 = vector.load %arg2[%c0_24, %c0_25, %c0_26, %c96, %c0_27] : memref<1x1x1x384x4xf32, #tpu.memory_space<vmem>>, vector<1x1x1x256x4xf32>
    %13 = vector.shape_cast %12 : vector<1x1x1x256x4xf32> to vector<256x4xf32>
    %c0_28 = arith.constant 0 : index
    %c0_29 = arith.constant 0 : index
    %c0_30 = arith.constant 0 : index
    %c112 = arith.constant 112 : index
    %c0_31 = arith.constant 0 : index
    %14 = vector.load %arg2[%c0_28, %c0_29, %c0_30, %c112, %c0_31] : memref<1x1x1x384x4xf32, #tpu.memory_space<vmem>>, vector<1x1x1x256x4xf32>
    %15 = vector.shape_cast %14 : vector<1x1x1x256x4xf32> to vector<256x4xf32>
    %c0_32 = arith.constant 0 : index
    %c0_33 = arith.constant 0 : index
    %c0_34 = arith.constant 0 : index
    %c128 = arith.constant 128 : index
    %c0_35 = arith.constant 0 : index
    %16 = vector.load %arg2[%c0_32, %c0_33, %c0_34, %c128, %c0_35] : memref<1x1x1x384x4xf32, #tpu.memory_space<vmem>>, vector<1x1x1x256x4xf32>
    %17 = vector.shape_cast %16 : vector<1x1x1x256x4xf32> to vector<256x4xf32>
    %18 = tpu.concatenate %1, %3, %5, %7, %9, %11, %13, %15, %17 in 1 : vector<256x4xf32>, vector<256x4xf32>, vector<256x4xf32>, vector<256x4xf32>, vector<256x4xf32>, vector<256x4xf32>, vector<256x4xf32>, vector<256x4xf32>, vector<256x4xf32> -> vector<256x36xf32>
    %c0_36 = arith.constant 0 : index
    %c0_37 = arith.constant 0 : index
    %19 = vector.load %arg3[%c0_36, %c0_37] : memref<36x128xf32, #tpu.memory_space<vmem>>, vector<36x128xf32>
    %cst = arith.constant dense<0.000000e+00> : vector<256x128xf32>
    %20 = tpu.matmul %18, %19, %cst {dimension_numbers = #tpu.dot_dimension_numbers<[1], [0], [0], [1], [0, 0, 1, 1], [], []>} : vector<256x36xf32>, vector<36x128xf32>, vector<256x128xf32> -> vector<256x128xf32>
    %c0_38 = arith.constant 0 : index
    %c0_39 = arith.constant 0 : index
    %21 = vector.load %arg4[%c0_38, %c0_39] : memref<1x128xf32, #tpu.memory_space<vmem>>, vector<1x128xf32>
    %22 = vector.shape_cast %21 : vector<1x128xf32> to vector<128xf32>
    %23 = vector.shape_cast %22 : vector<128xf32> to vector<1x128xf32>
    %24 = vector.broadcast %23 : vector<1x128xf32> to vector<256x128xf32>
    %25 = arith.addf %20, %24 : vector<256x128xf32>
    %c0_40 = arith.constant 0 : index
    %c0_41 = arith.constant 0 : index
    %c0_42 = arith.constant 0 : index
    %26 = vector.load %arg5[%c0_40, %c0_41, %c0_42] : memref<1x256x128xf32, #tpu.memory_space<vmem>>, vector<1x256x128xf32>
    %27 = vector.shape_cast %26 : vector<1x256x128xf32> to vector<256x128xf32>
    %28 = vector.shape_cast %25 : vector<256x128xf32> to vector<1x256x128xf32>
    tpu.vector_store %arg5[%c0_40, %c0_41, %c0_42], %28 {strides = array<i32>} : memref<1x256x128xf32, #tpu.memory_space<vmem>>, vector<1x256x128xf32>,
    return
  }
  func.func @transform_0(%arg0: i32, %arg1: i32) -> (i32, i32, i32, i32, i32) {
    %c0_i32 = arith.constant 0 : i32
    %c0_i32_0 = arith.constant 0 : i32
    %c0_i32_1 = arith.constant 0 : i32
    %c0_i32_2 = arith.constant 0 : i32
    return %arg0, %arg1, %c0_i32, %c0_i32_0, %c0_i32_1 : i32, i32, i32, i32, i32
  }
  func.func @transform_1(%arg0: i32, %arg1: i32) -> (i32, i32) {
    %c0_i32 = arith.constant 0 : i32
    %c0_i32_0 = arith.constant 0 : i32
    %c0_i32_1 = arith.constant 0 : i32
    return %c0_i32, %c0_i32_0 : i32, i32
  }
  func.func @transform_2(%arg0: i32, %arg1: i32) -> (i32, i32) {
    %c0_i32 = arith.constant 0 : i32
    %c0_i32_0 = arith.constant 0 : i32
    %c0_i32_1 = arith.constant 0 : i32
    return %c0_i32, %c0_i32_0 : i32, i32
  }
  func.func @transform_3(%arg0: i32, %arg1: i32) -> (i32, i32, i32) {
    %c0_i32 = arith.constant 0 : i32
    %c0_i32_0 = arith.constant 0 : i32
    return %arg0, %arg1, %c0_i32 : i32, i32, i32
  }
}

</mosaic_0001>

<bundles_post_ra>
// kernel: tpu_custom_call.1
= control target key start
LH: loop header
LB: loop body
LE: loop exit
PB: predicated region body
PF: predicated region fallthrough
CT: control target
= control target key end

     0   :  { %8 = vsyncpa [#allocation3], 0  ;;  %s3685_s0 = inlined_call_operand.vmem [shape: f32[2,1,1,384,4], index: 0, kind: input, shape index: {}]   ;;  %s3686_s1 = inlined_call_operand.vmem [shape: f32[36,128], index: 1, kind: input, shape index: {}]   ;;  %s3687_s2 = inlined_call_operand.vmem [shape: f32[1,128], index: 2, kind: input, shape index: {}]   ;;  %s3688_s3 = inlined_call_operand.hbm [shape: f32[2,256,128], index: 3, kind: output, shape index: {}]  }
   0x1   :  { %10 = vsyncpa [#allocation3 + $0x1], 0  ;;  %s2131_s12 = smov 0   ;;  %s2133_s13 = smov 0  }
   0x2   :  { %s2135_s14 = smov 0   ;;  %s2137_s15 = smov 0  }
   0x3   :  { %s2139_s16 = smov 0   ;;  %s2141_s17 = smov 0  }
   0x4 LB: > { %s1792_s18 = sadd.s32 4294967295, %s2099_s17   ;;  %s1793_s19 = sadd.s32 4294967294, %s2099_s17   ;;  %s2099_s17 = sphi %s2141_s17, %s16_s17   ;;  %s2095_s16 = sphi %s2139_s16, %s3769_s16   ;;  %s2091_s15 = sphi %s2137_s15, %s3768_s15   ;;  %s2087_s14 = sphi %s2135_s14, %s3767_s14   ;;  %s2083_s13 = sphi %s2133_s13, %s3766_s13   ;;  %s2079_s12 = sphi %s2131_s12, %s3765_s12  }
   0x5   : > { %s28_s20 = sadd.s32 1, %s2095_s16  ;;  %s107_s21 = sadd.s32 1, %s2087_s14 }
   0x6   : > { %p30_p0 = scmp.ge.s32.totalorder %s28_s20, 2  ;;  %p117_p1 = scmp.ne.s32.totalorder %s2087_s14, %s2083_s13 }
   0x7   : > { %p118_p2 = scmp.eq.s32.totalorder %s1792_s18, 1  ;;  %p123_p3 = scmp.ne.s32.totalorder %s2083_s13, %s2079_s12 }
   0x8   : > { %s3771_s20 = smov (%p30_p0, %s28_s20), 0  ;;  %p124_p5 = scmp.eq.s32.totalorder %s1793_s19, 1 }
   0x9   : > { %p2171_p4 = por %p118_p2, %p117_p1  ;;  %s102_s23 = ssub.s32 %s2095_s16, %s3771_s20 }
   0xa   : > { %p1796_p6 = scmp.ge.s32.totalorder %s2099_s17, 1  ;;  %p105_p7 = scmp.eq.s32.totalorder %s102_s23, 0 }
   0xb   : > { %p2178_p8 = por %p124_p5, %p123_p3  ;;  %p160_p9 = scmp.lt.s32.totalorder %s2099_s17, 3 }
   0xc   : > { %s2184_s25 = scalar_select %p105_p7, %s2087_s14, %s107_s21  }
   0xd   : > { %p161_p10 = pnand %p1796_p6, %p160_p9 }
   0xf   : > { %164 = sbr.rel (%p161_p10) target bundleno = 863 (0x35f), region = 32 }
  0x14   : > { %p188_p11 = scmp.lt.s32.totalorder %s2091_s15, 1  ;;  %s2101_s4 = smov 4   ;;  %vm1060_vm0 = vcmask 31744   ;;  %vm1093_vm1 = vcmask 64512   ;;  %vm1433_vm2 = vcmask 1043456   ;;  %vm1126_vm3 = vcmask 97280  }
  0x15   : > { %s2102_s5 = smov 8   ;;  %s2103_s6 = smov 12   ;;  %vm1159_vm4 = vcmask 130048   ;;  %vm1192_vm5 = vcmask 162816   ;;  %vm1225_vm6 = vcmask 195584   ;;  %vm1258_vm7 = vcmask 228352  }
  0x16   : > { %s189_s26 = scalar_select %p188_p11, %s2091_s15, 1  ;;  %vm1291_vm8 = vcmask 261120   ;;  %vm1336_vm9 = vcmask 293888  }
  0x17   : > { %s2104_s7 = smov 16   ;;  %s2105_s8 = smov 20  }
  0x18   : > { %s1944_s27 = smul.u32 384, %s189_s26  ;;  %s2106_s9 = smov 24  }
  0x19   : > { %s2107_s21 = smov 28   ;;  %s1838_s11 = sshll.u32 %s2091_s15, 12 }
  0x1a   : > { %s2191_s30 = scalar_lea.vmem %s3685_s0, %s1944_s27  ;;  %s3627_s23 = scalar_lea.hbm %s3688_s3, %s1838_s11 }
  0x1b   : > { %v2194_v0 = vld [vmem:[%s2191_s30 + $0x20] sm:$0xff]  ;;  %v200_v1 = vld [vmem:[%s2191_s30 + $0x10] sm:$0xff]  ;;  %v2201_v2 = vld [vmem:[%s2191_s30 + $0x28] sm:$0xff]  ;;  %s2109_s27 = smov [#allocation2]  }
  0x1c   : > { %282 = vrot.lane.b32.xlu1 %v2194_v0, %s2101_s4  ;;  %278 = vrot.lane.b32.xlu0 %v200_v1, %s2101_s4  ;;  %v201_v3 = vld [vmem:[%s2191_s30 + $0x18] sm:$0xff]  ;;  %v2211_v5 = vld [vmem:[%s2191_s30 + $0x30] sm:$0xff]  ;;  %s2027_s28 = sshll.u32 %s2109_s27, 4  ;;  %s2028_s28 = int_to_ptr.vmem [resolvable:$false] %s2027_s28 }
  0x1d   : > { %v2208_v4 = vld [vmem:[%s2191_s30 + $0x38] sm:$0xff]  ;;  %v2218_v6 = vld [vmem:[%s2191_s30 + $0x48] sm:$0xff]  ;;  %v2221_v7 = vld [vmem:[%s2191_s30 + $0x40] sm:$0xff]  ;;  %s2029_s29 = scalar_lea.vmem %s2028_s28, 8192 }
  0x1e   : > { %v2228_v8 = vld [vmem:[%s2191_s30 + $0x58] sm:$0xff]  ;;  %v2231_v9 = vld [vmem:[%s2191_s30 + $0x50] sm:$0xff]  ;;  %v2238_v10 = vld [vmem:[%s2191_s30 + $0x68] sm:$0xff] }
  0x1f   : > { %v2241_v11 = vld [vmem:[%s2191_s30 + $0x60] sm:$0xff]  ;;  %v2248_v12 = vld [vmem:[%s2191_s30 + $0x78] sm:$0xff]  ;;  %v2251_v13 = vld [vmem:[%s2191_s30 + $0x70] sm:$0xff] }
  0x20   : > { %284 = vrot.lane.b32.xlu1 %v2201_v2, %s2101_s4  ;;  %280 = vrot.lane.b32.xlu0 %v201_v3, %s2101_s4  ;;  %v2258_v14 = vld [vmem:[%s2191_s30 + $0x88] sm:$0xff]  ;;  %v2261_v15 = vld [vmem:[%s2191_s30 + $0x80] sm:$0xff] }
  0x21   : > { %v2268_v16 = vld [vmem:[%s2191_s30 + $0x98] sm:$0xff]  ;;  %v2271_v17 = vld [vmem:[%s2191_s30 + $0x90] sm:$0xff]  ;;  %v2278_v18 = vld [vmem:[%s2191_s30 + $0xa8] sm:$0xff] }
  0x22   : > { %v2281_v19 = vld [vmem:[%s2191_s30 + $0xa0] sm:$0xff]  ;;  %v2288_v20 = vld [vmem:[%s2191_s30 + $0xb8] sm:$0xff]  ;;  %v2291_v21 = vld [vmem:[%s2191_s30 + $0xb0] sm:$0xff] }
  0x23   : > { %v2298_v22 = vld [vmem:[%s2191_s30 + $0xc8] sm:$0xff]  ;;  %v2301_v23 = vld [vmem:[%s2191_s30 + $0xc0] sm:$0xff]  ;;  %v2308_v24 = vld [vmem:[%s2191_s30 + $0xd8] sm:$0xff] }
  0x24   : > { %288 = vrot.lane.b32.xlu1 %v2208_v4, %s2101_s4  ;;  %286 = vrot.lane.b32.xlu0 %v2211_v5, %s2101_s4  ;;  %v2311_v25 = vld [vmem:[%s2191_s30 + $0xd0] sm:$0xff]  ;;  %v2318_v26 = vld [vmem:[%s2191_s30 + $0xe8] sm:$0xff] }
  0x25   : > { %v2321_v27 = vld [vmem:[%s2191_s30 + $0xe0] sm:$0xff]  ;;  %v2328_v28 = vld [vmem:[%s2191_s30 + $0xf8] sm:$0xff]  ;;  %v2331_v29 = vld [vmem:[%s2191_s30 + $0xf0] sm:$0xff] }
  0x26   : > { %v2338_v30 = vld [vmem:[%s2191_s30 + $0x108] sm:$0xff]  ;;  %v2341_v31 = vld [vmem:[%s2191_s30 + $0x100] sm:$0xff]  ;;  %v2416_v36 = vld [vmem:[%s2191_s30 + $0x118] sm:$0xff] }
  0x27   : > { %v2419_v37 = vld [vmem:[%s2191_s30 + $0x110] sm:$0xff] }
  0x28   : > { %292 = vrot.lane.b32.xlu1 %v2218_v6, %s2101_s4  ;;  %290 = vrot.lane.b32.xlu0 %v2221_v7, %s2101_s4 }
  0x2c   : > { %296 = vrot.lane.b32.xlu1 %v2228_v8, %s2101_s4  ;;  %294 = vrot.lane.b32.xlu0 %v2231_v9, %s2101_s4 }
  0x30   : > { %300 = vrot.lane.b32.xlu1 %v2238_v10, %s2101_s4  ;;  %298 = vrot.lane.b32.xlu0 %v2241_v11, %s2101_s4 }
  0x34   : > { %304 = vrot.lane.b32.xlu1 %v2248_v12, %s2101_s4  ;;  %302 = vrot.lane.b32.xlu0 %v2251_v13, %s2101_s4 }
  0x38   : > { %308 = vrot.lane.b32.xlu1 %v2258_v14, %s2101_s4  ;;  %306 = vrot.lane.b32.xlu0 %v2261_v15, %s2101_s4 }
  0x3c   : > { %312 = vrot.lane.b32.xlu1 %v2268_v16, %s2101_s4  ;;  %310 = vrot.lane.b32.xlu0 %v2271_v17, %s2101_s4 }
  0x40   : > { %316 = vrot.lane.b32.xlu1 %v2278_v18, %s2101_s4  ;;  %314 = vrot.lane.b32.xlu0 %v2281_v19, %s2101_s4 }
  0x44   : > { %320 = vrot.lane.b32.xlu1 %v2288_v20, %s2101_s4  ;;  %318 = vrot.lane.b32.xlu0 %v2291_v21, %s2101_s4 }
  0x48   : > { %324 = vrot.lane.b32.xlu1 %v2298_v22, %s2101_s4  ;;  %322 = vrot.lane.b32.xlu0 %v2301_v23, %s2101_s4 }
  0x4c   : > { %328 = vrot.lane.b32.xlu1 %v2308_v24, %s2101_s4  ;;  %326 = vrot.lane.b32.xlu0 %v2311_v25, %s2101_s4 }
  0x50   : > { %332 = vrot.lane.b32.xlu1 %v2318_v26, %s2101_s4  ;;  %330 = vrot.lane.b32.xlu0 %v2321_v27, %s2101_s4 }
  0x54   : > { %336 = vrot.lane.b32.xlu1 %v2328_v28, %s2101_s4  ;;  %334 = vrot.lane.b32.xlu0 %v2331_v29, %s2101_s4 }
  0x58   : > { %340 = vrot.lane.b32.xlu1 %v2338_v30, %s2101_s4  ;;  %338 = vrot.lane.b32.xlu0 %v2341_v31, %s2101_s4 }
  0x5c   : > { %378 = vrot.lane.b32.xlu1 %v2201_v2, %s2102_s5  ;;  %376 = vrot.lane.b32.xlu0 %v2194_v0, %s2102_s5 }
  0x60   : > { %382 = vrot.lane.b32.xlu1 %v2208_v4, %s2102_s5  ;;  %380 = vrot.lane.b32.xlu0 %v2211_v5, %s2102_s5 }
  0x64   : > { %386 = vrot.lane.b32.xlu1 %v2218_v6, %s2102_s5  ;;  %384 = vrot.lane.b32.xlu0 %v2221_v7, %s2102_s5 }
  0x68   : > { %390 = vrot.lane.b32.xlu1 %v2228_v8, %s2102_s5  ;;  %388 = vrot.lane.b32.xlu0 %v2231_v9, %s2102_s5 }
  0x6c   : > { %394 = vrot.lane.b32.xlu1 %v2238_v10, %s2102_s5  ;;  %392 = vrot.lane.b32.xlu0 %v2241_v11, %s2102_s5 }
  0x70   : > { %398 = vrot.lane.b32.xlu1 %v2248_v12, %s2102_s5  ;;  %396 = vrot.lane.b32.xlu0 %v2251_v13, %s2102_s5 }
  0x74   : > { %402 = vrot.lane.b32.xlu1 %v2258_v14, %s2102_s5  ;;  %400 = vrot.lane.b32.xlu0 %v2261_v15, %s2102_s5 }
  0x78   : > { %406 = vrot.lane.b32.xlu1 %v2268_v16, %s2102_s5  ;;  %404 = vrot.lane.b32.xlu0 %v2271_v17, %s2102_s5 }
  0x7c   : > { %410 = vrot.lane.b32.xlu1 %v2278_v18, %s2102_s5  ;;  %408 = vrot.lane.b32.xlu0 %v2281_v19, %s2102_s5 }
  0x80   : > { %414 = vrot.lane.b32.xlu1 %v2288_v20, %s2102_s5  ;;  %412 = vrot.lane.b32.xlu0 %v2291_v21, %s2102_s5 }
  0x84   : > { %418 = vrot.lane.b32.xlu1 %v2298_v22, %s2102_s5  ;;  %416 = vrot.lane.b32.xlu0 %v2301_v23, %s2102_s5 }
  0x88   : > { %422 = vrot.lane.b32.xlu1 %v2308_v24, %s2102_s5  ;;  %420 = vrot.lane.b32.xlu0 %v2311_v25, %s2102_s5 }
  0x8c   : > { %426 = vrot.lane.b32.xlu1 %v2318_v26, %s2102_s5  ;;  %424 = vrot.lane.b32.xlu0 %v2321_v27, %s2102_s5 }
  0x8e   : > { %v2399_v32 = vpop.permute.xlu1 %282  ;;  %v2401_v33 = vpop.permute.xlu0 %278 }
  0x8f   : > { %3691 = vst [vmem:[#allocation5_spill] sm:$0xff] %v2399_v32  ;;  %3692 = vst [vmem:[#allocation6_spill] sm:$0xff] %v2401_v33 }
  0x90   : > { %430 = vrot.lane.b32.xlu1 %v2328_v28, %s2102_s5  ;;  %428 = vrot.lane.b32.xlu0 %v2331_v29, %s2102_s5 }
  0x92   : > { %v2407_v34 = vpop.permute.xlu1 %284  ;;  %v2409_v35 = vpop.permute.xlu0 %280 }
  0x93   : > { %3693 = vst [vmem:[#allocation7_spill] sm:$0xff] %v2407_v34  ;;  %3694 = vst [vmem:[#allocation8_spill] sm:$0xff] %v2409_v35 }
  0x94   : > { %434 = vrot.lane.b32.xlu1 %v2338_v30, %s2102_s5  ;;  %432 = vrot.lane.b32.xlu0 %v2341_v31, %s2102_s5 }
  0x96   : > { %v2421_v38 = vpop.permute.xlu1 %288  ;;  %v2423_v39 = vpop.permute.xlu0 %286 }
  0x97   : > { %v1066_v35 = vsel %vm1060_vm0, %v2201_v2, %v2421_v38 }
  0x98   : > { %438 = vrot.lane.b32.xlu1 %v2416_v36, %s2102_s5  ;;  %436 = vrot.lane.b32.xlu0 %v2419_v37, %s2102_s5 }
  0x9a   : > { %v2429_v40 = vpop.permute.xlu1 %292  ;;  %v2431_v41 = vpop.permute.xlu0 %290 }
  0x9b   : > { %v1068_v2 = vsel %vm1060_vm0, %v2208_v4, %v2429_v40 }
  0x9c   : > { %476 = vrot.lane.b32.xlu1 %v2208_v4, %s2103_s6  ;;  %474 = vrot.lane.b32.xlu0 %v2211_v5, %s2103_s6 }
  0x9e   : > { %v2437_v42 = vpop.permute.xlu1 %296  ;;  %v2439_v43 = vpop.permute.xlu0 %294 }
  0x9f   : > { %v1070_v4 = vsel %vm1060_vm0, %v2218_v6, %v2437_v42 }
  0xa0   : > { %480 = vrot.lane.b32.xlu1 %v2218_v6, %s2103_s6  ;;  %478 = vrot.lane.b32.xlu0 %v2221_v7, %s2103_s6 }
  0xa2   : > { %v2445_v44 = vpop.permute.xlu1 %300  ;;  %v2447_v45 = vpop.permute.xlu0 %298 }
  0xa4   : > { %484 = vrot.lane.b32.xlu1 %v2228_v8, %s2103_s6  ;;  %482 = vrot.lane.b32.xlu0 %v2231_v9, %s2103_s6 }
  0xa6   : > { %v2453_v46 = vpop.permute.xlu1 %304  ;;  %v2455_v47 = vpop.permute.xlu0 %302 }
  0xa8   : > { %488 = vrot.lane.b32.xlu1 %v2238_v10, %s2103_s6  ;;  %486 = vrot.lane.b32.xlu0 %v2241_v11, %s2103_s6 }
  0xaa   : > { %v2461_v48 = vpop.permute.xlu1 %308  ;;  %v2463_v49 = vpop.permute.xlu0 %306 }
  0xac   : > { %492 = vrot.lane.b32.xlu1 %v2248_v12, %s2103_s6  ;;  %490 = vrot.lane.b32.xlu0 %v2251_v13, %s2103_s6 }
  0xae   : > { %v2469_v50 = vpop.permute.xlu1 %312  ;;  %v2471_v51 = vpop.permute.xlu0 %310 }
  0xaf   : > { %3695 = vst [vmem:[#allocation9_spill] sm:$0xff] %v2469_v50  ;;  %3696 = vst [vmem:[#allocation10_spill] sm:$0xff] %v2471_v51  ;;  %v2550_v50 = vld [vmem:[%s2191_s30 + $0x128] sm:$0xff] }
  0xb0   : > { %496 = vrot.lane.b32.xlu1 %v2258_v14, %s2103_s6  ;;  %494 = vrot.lane.b32.xlu0 %v2261_v15, %s2103_s6 }
  0xb2   : > { %v2477_v52 = vpop.permute.xlu1 %316  ;;  %v2479_v53 = vpop.permute.xlu0 %314 }
  0xb3   : > { %3697 = vst [vmem:[#allocation11_spill] sm:$0xff] %v2477_v52  ;;  %3698 = vst [vmem:[#allocation12_spill] sm:$0xff] %v2479_v53 }
  0xb4   : > { %500 = vrot.lane.b32.xlu1 %v2268_v16, %s2103_s6  ;;  %498 = vrot.lane.b32.xlu0 %v2271_v17, %s2103_s6 }
  0xb6   : > { %v2485_v54 = vpop.permute.xlu1 %320  ;;  %v2487_v55 = vpop.permute.xlu0 %318 }
  0xb8   : > { %504 = vrot.lane.b32.xlu1 %v2278_v18, %s2103_s6  ;;  %502 = vrot.lane.b32.xlu0 %v2281_v19, %s2103_s6 }
  0xba   : > { %v2493_v56 = vpop.permute.xlu1 %324  ;;  %v2495_v57 = vpop.permute.xlu0 %322 }
  0xbc   : > { %508 = vrot.lane.b32.xlu1 %v2288_v20, %s2103_s6  ;;  %506 = vrot.lane.b32.xlu0 %v2291_v21, %s2103_s6 }
  0xbe   : > { %v2501_v58 = vpop.permute.xlu1 %328  ;;  %v2503_v59 = vpop.permute.xlu0 %326 }
  0xc0   : > { %512 = vrot.lane.b32.xlu1 %v2298_v22, %s2103_s6  ;;  %510 = vrot.lane.b32.xlu0 %v2301_v23, %s2103_s6 }
  0xc2   : > { %v2509_v60 = vpop.permute.xlu1 %332  ;;  %v2511_v61 = vpop.permute.xlu0 %330 }
  0xc4   : > { %516 = vrot.lane.b32.xlu1 %v2308_v24, %s2103_s6  ;;  %514 = vrot.lane.b32.xlu0 %v2311_v25, %s2103_s6 }
  0xc6   : > { %v2517_v62 = vpop.permute.xlu1 %336  ;;  %v2519_v63 = vpop.permute.xlu0 %334 }
  0xc8   : > { %520 = vrot.lane.b32.xlu1 %v2318_v26, %s2103_s6  ;;  %518 = vrot.lane.b32.xlu0 %v2321_v27, %s2103_s6 }
  0xca   : > { %v2525_v1 = vpop.permute.xlu1 %340  ;;  %v2527_v3 = vpop.permute.xlu0 %338 }
  0xcc   : > { %524 = vrot.lane.b32.xlu1 %v2328_v28, %s2103_s6  ;;  %522 = vrot.lane.b32.xlu0 %v2331_v29, %s2103_s6 }
  0xce   : > { %v2533_v52 = vpop.permute.xlu1 %378  ;;  %v2535_v34 = vpop.permute.xlu0 %376 }
  0xcf   : > { %3699 = vst [vmem:[#allocation13_spill] sm:$0xff] %v2533_v52  ;;  %3700 = vst [vmem:[#allocation14_spill] sm:$0xff] %v2535_v34  ;;  %v2553_v52 = vld [vmem:[%s2191_s30 + $0x120] sm:$0xff] }
  0xd0   : > { %528 = vrot.lane.b32.xlu1 %v2338_v30, %s2103_s6  ;;  %526 = vrot.lane.b32.xlu0 %v2341_v31, %s2103_s6 }
  0xd2   : > { %v2541_v53 = vpop.permute.xlu1 %382  ;;  %v2543_v32 = vpop.permute.xlu0 %380 }
  0xd3   : > { %3701 = vst [vmem:[#allocation15_spill] sm:$0xff] %v2541_v53  ;;  %3702 = vst [vmem:[#allocation16_spill] sm:$0xff] %v2543_v32  ;;  %v1065_v53 = vsel %vm1060_vm0, %v2194_v0, %v2423_v39  ;;  %v1067_v0 = vsel %vm1060_vm0, %v2211_v5, %v2431_v41  ;;  %v1069_v5 = vsel %vm1060_vm0, %v2221_v7, %v2439_v43 }
  0xd4   : > { %532 = vrot.lane.b32.xlu1 %v2416_v36, %s2103_s6  ;;  %530 = vrot.lane.b32.xlu0 %v2419_v37, %s2103_s6 }
  0xd6   : > { %v387_v32 = vpop.permute.xlu1 %386  ;;  %v385_v34 = vpop.permute.xlu0 %384 }
  0xd7   : > { %v2562_v51 = vsel %vm1093_vm1, %v1066_v35, %v387_v32  ;;  %v2565_v33 = vsel %vm1093_vm1, %v1065_v53, %v385_v34 }
  0xd8   : > { %536 = vrot.lane.b32.xlu1 %v2550_v50, %s2103_s6  ;;  %534 = vrot.lane.b32.xlu0 %v2553_v52, %s2103_s6  ;;  %s2108_s6 = smov 32  }
  0xda   : > { %v391_v38 = vpop.permute.xlu1 %390  ;;  %v389_v32 = vpop.permute.xlu0 %388 }
  0xdb   : > { %v2578_v35 = vsel %vm1093_vm1, %v1068_v2, %v391_v38  ;;  %v2581_v34 = vsel %vm1093_vm1, %v1067_v0, %v389_v32 }
  0xdc   : > { %574 = vrot.lane.b32.xlu1 %v2218_v6, %s2104_s7  ;;  %572 = vrot.lane.b32.xlu0 %v2221_v7, %s2104_s7  ;;  %v1072_v6 = vsel %vm1060_vm0, %v2228_v8, %v2445_v44  ;;  %v1071_v7 = vsel %vm1060_vm0, %v2231_v9, %v2447_v45  ;;  %v1074_v44 = vsel %vm1060_vm0, %v2238_v10, %v2453_v46 }
  0xdd   : > { %v1073_v45 = vsel %vm1060_vm0, %v2241_v11, %v2455_v47  ;;  %v1076_v46 = vsel %vm1060_vm0, %v2248_v12, %v2461_v48  ;;  %v1075_v47 = vsel %vm1060_vm0, %v2251_v13, %v2463_v49 }
  0xde   : > { %v395_v39 = vpop.permute.xlu1 %394  ;;  %v393_v40 = vpop.permute.xlu0 %392 }
  0xdf   : > { %v2594_v41 = vsel %vm1093_vm1, %v1070_v4, %v395_v39  ;;  %v2597_v53 = vsel %vm1093_vm1, %v1069_v5, %v393_v40 }
  0xe0   : > { %578 = vrot.lane.b32.xlu1 %v2228_v8, %s2104_s7  ;;  %576 = vrot.lane.b32.xlu0 %v2231_v9, %s2104_s7 }
  0xe2   : > { %v399_v42 = vpop.permute.xlu1 %398  ;;  %v397_v43 = vpop.permute.xlu0 %396 }
  0xe3   : > { %v2610_v2 = vsel %vm1093_vm1, %v1072_v6, %v399_v42  ;;  %v2613_v0 = vsel %vm1093_vm1, %v1071_v7, %v397_v43 }
  0xe4   : > { %582 = vrot.lane.b32.xlu1 %v2238_v10, %s2104_s7  ;;  %580 = vrot.lane.b32.xlu0 %v2241_v11, %s2104_s7 }
  0xe6   : > { %v403_v38 = vpop.permute.xlu1 %402  ;;  %v401_v32 = vpop.permute.xlu0 %400 }
  0xe7   : > { %v2626_v4 = vsel %vm1093_vm1, %v1074_v44, %v403_v38  ;;  %v2629_v5 = vsel %vm1093_vm1, %v1073_v45, %v401_v32  ;;  %v1082_v44 = vsel %vm1060_vm0, %v2278_v18, %v2485_v54  ;;  %v1081_v45 = vsel %vm1060_vm0, %v2281_v19, %v2487_v55 }
  0xe8   : > { %586 = vrot.lane.b32.xlu1 %v2248_v12, %s2104_s7  ;;  %584 = vrot.lane.b32.xlu0 %v2251_v13, %s2104_s7  ;;  %v1084_v54 = vsel %vm1060_vm0, %v2288_v20, %v2493_v56  ;;  %v1083_v55 = vsel %vm1060_vm0, %v2291_v21, %v2495_v57  ;;  %v1086_v56 = vsel %vm1060_vm0, %v2298_v22, %v2501_v58 }
  0xe9   : > { %v1085_v57 = vsel %vm1060_vm0, %v2301_v23, %v2503_v59 }
  0xea   : > { %v407_v39 = vpop.permute.xlu1 %406  ;;  %v405_v40 = vpop.permute.xlu0 %404 }
  0xeb   : > { %v2642_v6 = vsel %vm1093_vm1, %v1076_v46, %v407_v39  ;;  %v2645_v7 = vsel %vm1093_vm1, %v1075_v47, %v405_v40 }
  0xec   : > { %590 = vrot.lane.b32.xlu1 %v2258_v14, %s2104_s7  ;;  %588 = vrot.lane.b32.xlu0 %v2261_v15, %s2104_s7 }
  0xee   : > { %v2651_v42 = vpop.permute.xlu1 %410  ;;  %v2653_v48 = vpop.permute.xlu0 %408 }
  0xf0   : > { %594 = vrot.lane.b32.xlu1 %v2268_v16, %s2104_s7  ;;  %592 = vrot.lane.b32.xlu0 %v2271_v17, %s2104_s7 }
  0xf2   : > { %v2659_v49 = vpop.permute.xlu1 %414  ;;  %v2661_v43 = vpop.permute.xlu0 %412 }
  0xf4   : > { %598 = vrot.lane.b32.xlu1 %v2278_v18, %s2104_s7  ;;  %596 = vrot.lane.b32.xlu0 %v2281_v19, %s2104_s7 }
  0xf6   : > { %v419_v38 = vpop.permute.xlu1 %418  ;;  %v417_v32 = vpop.permute.xlu0 %416 }
  0xf7   : > { %v2674_v46 = vsel %vm1093_vm1, %v1082_v44, %v419_v38  ;;  %v2677_v47 = vsel %vm1093_vm1, %v1081_v45, %v417_v32 }
  0xf8   : > { %604 = vrot.lane.b32.xlu1 %v2301_v23, %s2104_s7  ;;  %600 = vrot.lane.b32.xlu0 %v2291_v21, %s2104_s7 }
  0xfa   : > { %v423_v39 = vpop.permute.xlu1 %422  ;;  %v421_v40 = vpop.permute.xlu0 %420 }
  0xfb   : > { %v2690_v44 = vsel %vm1093_vm1, %v1084_v54, %v423_v39  ;;  %v2693_v45 = vsel %vm1093_vm1, %v1083_v55, %v421_v40 }
  0xfc   : > { %670 = vrot.lane.b32.xlu1 %v2231_v9, %s2105_s8  ;;  %606 = vrot.lane.b32.xlu0 %v2298_v22, %s2104_s7  ;;  %v1088_v9 = vsel %vm1060_vm0, %v2308_v24, %v2509_v60  ;;  %v1087_v22 = vsel %vm1060_vm0, %v2311_v25, %v2511_v61  ;;  %v1089_v60 = vsel %vm1060_vm0, %v2321_v27, %v2519_v63 }
  0xfd   : > { %v1092_v63 = vsel %vm1060_vm0, %v2328_v28, %v2525_v1  ;;  %v1326_v1 = vld [vmem:[%s3686_s1 + $0x10] sm:$0xff] }
  0xfe   : > { %v427_v38 = vpop.permute.xlu1 %426  ;;  %v425_v32 = vpop.permute.xlu0 %424 }
  0xff   : > { %v2706_v54 = vsel %vm1093_vm1, %v1086_v56, %v427_v38  ;;  %v2709_v55 = vsel %vm1093_vm1, %v1085_v57, %v425_v32  ;;  %v1091_v32 = vsel %vm1060_vm0, %v2331_v29, %v2527_v3 }
 0x100   : > { %672 = vrot.lane.b32.xlu1 %v2228_v8, %s2105_s8  ;;  %702 = vrot.lane.b32.xlu0 %v2311_v25, %s2105_s8  ;;  %v1090_v8 = vsel %vm1060_vm0, %v2318_v26, %v2517_v62  ;;  %v1328_v62 = vld [vmem:[%s3686_s1 + $0x20] sm:$0xf] }
 0x101   : > { %1876 = vmatprep.subr.msk.mxu0 %vm1433_vm2, %v1328_v62  ;;  %1934 = vmatprep.subr.msk.mxu1 %vm1433_vm2, %v1328_v62 }
 0x102   : > { %v431_v58 = vpop.permute.xlu1 %430  ;;  %v429_v59 = vpop.permute.xlu0 %428  ;;  %1877 = vmatpush3.msk.msra.mxu0 %vm1433_vm2, %v1328_v62  ;;  %1939 = vmatpush3.msk.msra.mxu1 %vm1433_vm2, %v1328_v62 }
 0x103   : > { %v2722_v39 = vsel %vm1093_vm1, %v1088_v9, %v431_v58  ;;  %v2725_v40 = vsel %vm1093_vm1, %v1087_v22, %v429_v59  ;;  %v1327_v58 = vld [vmem:[%s3686_s1 + $0x18] sm:$0xff] }
 0x104   : > { %768 = vrot.lane.b32.xlu1 %v2241_v11, %s2106_s9  ;;  %704 = vrot.lane.b32.xlu0 %v2308_v24, %s2105_s8 }
 0x105   : > { %1878 = vmatprep.subr.mxu0 %v1327_v58  ;;  %1935 = vmatprep.subr.mxu1 %v1327_v58 }
 0x106   : > { %v435_v61 = vpop.permute.xlu1 %434  ;;  %v433_v56 = vpop.permute.xlu0 %432  ;;  %1879 = vmatpush3.msra.mxu0 %v1327_v58  ;;  %1940 = vmatpush3.msra.mxu1 %v1327_v58 }
 0x107   : > { %v2738_v57 = vsel %vm1093_vm1, %v1090_v8, %v435_v61  ;;  %v2741_v38 = vsel %vm1093_vm1, %v1089_v60, %v433_v56  ;;  %1880 = vmatprep.subr.mxu0 %v1326_v1  ;;  %1936 = vmatprep.subr.mxu1 %v1326_v1  ;;  %v1325_v61 = vld [vmem:[%s3686_s1 + $0x8] sm:$0xff]  ;;  %v1324_v56 = vld [vmem:[%s3686_s1] sm:$0xff] }
 0x108   : > { %770 = vrot.lane.b32.xlu1 %v2238_v10, %s2106_s9  ;;  %800 = vrot.lane.b32.xlu0 %v2321_v27, %s2106_s9 }
 0x109   : > { %1881 = vmatpush3.msra.mxu0 %v1326_v1  ;;  %1941 = vmatpush3.msra.mxu1 %v1326_v1 }
 0x10a   : > { %v439_v9 = vpop.permute.xlu1 %438  ;;  %v437_v22 = vpop.permute.xlu0 %436  ;;  %1882 = vmatprep.subr.mxu0 %v1325_v61  ;;  %1937 = vmatprep.subr.mxu1 %v1325_v61 }
 0x10b   : > { %v2760_v59 = vsel %vm1093_vm1, %v1092_v63, %v439_v9  ;;  %v2763_v8 = vsel %vm1093_vm1, %v1091_v32, %v437_v22  ;;  %1883 = vmatpush3.msra.mxu0 %v1325_v61  ;;  %1942 = vmatpush3.msra.mxu1 %v1325_v61 }
 0x10c   : > { %866 = vrot.lane.b32.xlu1 %v2251_v13, %s2107_s21  ;;  %802 = vrot.lane.b32.xlu0 %v2318_v26, %s2106_s9 }
 0x10d   : > { %1884 = vmatprep.subr.mxu0 %v1324_v56  ;;  %1938 = vmatprep.subr.mxu1 %v1324_v56 }
 0x10e   : > { %v2772_v3 = vpop.permute.xlu1 %476  ;;  %v2774_v60 = vpop.permute.xlu0 %474  ;;  %1885 = vmatpush3.msra.mxu0 %v1324_v56  ;;  %1943 = vmatpush3.msra.mxu1 %v1324_v56 }
 0x110   : > { %608 = vrot.lane.b32.xlu1 %v2311_v25, %s2104_s7  ;;  %898 = vrot.lane.b32.xlu0 %v2331_v29, %s2107_s21 }
 0x112   : > { %v2786_v62 = vpop.permute.xlu1 %480  ;;  %v2788_v63 = vpop.permute.xlu0 %478 }
 0x114   : > { %900 = vrot.lane.b32.xlu1 %v2328_v28, %s2107_s21  ;;  %868 = vrot.lane.b32.xlu0 %v2248_v12, %s2107_s21 }
 0x116   : > { %v485_v25 = vpop.permute.xlu1 %484  ;;  %v483_v32 = vpop.permute.xlu0 %482 }
 0x117   : > { %v2796_v9 = vsel %vm1126_vm3, %v2562_v51, %v485_v25  ;;  %v2800_v22 = vsel %vm1126_vm3, %v2565_v33, %v483_v32 }
 0x118   : > { %996 = vrot.lane.b32.xlu1 %v2341_v31, %s2108_s6  ;;  %964 = vrot.lane.b32.xlu0 %v2261_v15, %s2108_s6 }
 0x11a   : > { %v489_v58 = vpop.permute.xlu1 %488  ;;  %v487_v1 = vpop.permute.xlu0 %486 }
 0x11b   : > { %v2808_v61 = vsel %vm1126_vm3, %v2578_v35, %v489_v58  ;;  %v2812_v51 = vsel %vm1126_vm3, %v2581_v34, %v487_v1 }
 0x11c   : > { %3703 = vst [vmem:[#allocation17_spill] sm:$0xff] %v2808_v61  ;;  %674 = vrot.lane.b32.xlu1 %v2241_v11, %s2105_s8  ;;  %610 = vrot.lane.b32.xlu0 %v2308_v24, %s2104_s7 }
 0x11e   : > { %v493_v33 = vpop.permute.xlu1 %492  ;;  %v491_v56 = vpop.permute.xlu0 %490 }
 0x11f   : > { %v2820_v25 = vsel %vm1126_vm3, %v2594_v41, %v493_v33  ;;  %v2824_v35 = vsel %vm1126_vm3, %v2597_v53, %v491_v56 }
 0x120   : > { %3704 = vst [vmem:[#allocation18_spill] sm:$0xff] %v2820_v25  ;;  %3705 = vst [vmem:[#allocation19_spill] sm:$0xff] %v2824_v35  ;;  %966 = vrot.lane.b32.xlu1 %v2258_v14, %s2108_s6  ;;  %706 = vrot.lane.b32.xlu0 %v2321_v27, %s2105_s8  ;;  %v3729_v25 = vld [vmem:[#allocation10_spill] sm:$0xff] }
 0x122   : > { %v497_v11 = vpop.permute.xlu1 %496  ;;  %v495_v34 = vpop.permute.xlu0 %494 }
 0x123   : > { %v2832_v24 = vsel %vm1126_vm3, %v2610_v2, %v497_v11  ;;  %v2836_v41 = vsel %vm1126_vm3, %v2613_v0, %v495_v34 }
 0x124   : > { %3706 = vst [vmem:[#allocation20_spill] sm:$0xff] %v2832_v24  ;;  %3707 = vst [vmem:[#allocation21_spill] sm:$0xff] %v2836_v41  ;;  %676 = vrot.lane.b32.xlu1 %v2238_v10, %s2105_s8  ;;  %998 = vrot.lane.b32.xlu0 %v2338_v30, %s2108_s6 }
 0x126   : > { %v501_v53 = vpop.permute.xlu1 %500  ;;  %v499_v32 = vpop.permute.xlu0 %498 }
 0x127   : > { %v2844_v58 = vsel %vm1126_vm3, %v2626_v4, %v501_v53  ;;  %v2848_v2 = vsel %vm1126_vm3, %v2629_v5, %v499_v32 }
 0x128   : > { %3708 = vst [vmem:[#allocation22_spill] sm:$0xff] %v2844_v58  ;;  %3709 = vst [vmem:[#allocation23_spill] sm:$0xff] %v2848_v2  ;;  %772 = vrot.lane.b32.xlu1 %v2251_v13, %s2106_s9  ;;  %708 = vrot.lane.b32.xlu0 %v2318_v26, %s2105_s8 }
 0x12a   : > { %v505_v10 = vpop.permute.xlu1 %504  ;;  %v503_v0 = vpop.permute.xlu0 %502 }
 0x12b   : > { %v2856_v1 = vsel %vm1126_vm3, %v2642_v6, %v505_v10  ;;  %v2860_v4 = vsel %vm1126_vm3, %v2645_v7, %v503_v0 }
 0x12c   : > { %3710 = vst [vmem:[#allocation24_spill] sm:$0xff] %v2856_v1  ;;  %3711 = vst [vmem:[#allocation25_spill] sm:$0xff] %v2860_v4  ;;  %774 = vrot.lane.b32.xlu1 %v2248_v12, %s2106_s9  ;;  %804 = vrot.lane.b32.xlu0 %v2331_v29, %s2106_s9 }
 0x12e   : > { %v2866_v5 = vpop.permute.xlu1 %508  ;;  %v2868_v33 = vpop.permute.xlu0 %506 }
 0x130   : > { %870 = vrot.lane.b32.xlu1 %v2261_v15, %s2107_s21  ;;  %806 = vrot.lane.b32.xlu0 %v2328_v28, %s2106_s9 }
 0x132   : > { %v2874_v6 = vpop.permute.xlu1 %512  ;;  %v2876_v7 = vpop.permute.xlu0 %510 }
 0x134   : > { %612 = vrot.lane.b32.xlu1 %v2321_v27, %s2104_s7  ;;  %902 = vrot.lane.b32.xlu0 %v2341_v31, %s2107_s21 }
 0x136   : > { %v517_v56 = vpop.permute.xlu1 %516  ;;  %v515_v11 = vpop.permute.xlu0 %514 }
 0x137   : > { %v2884_v34 = vsel %vm1126_vm3, %v2674_v46, %v517_v56  ;;  %v2888_v53 = vsel %vm1126_vm3, %v2677_v47, %v515_v11 }
 0x138   : > { %904 = vrot.lane.b32.xlu1 %v2338_v30, %s2107_s21  ;;  %872 = vrot.lane.b32.xlu0 %v2258_v14, %s2107_s21 }
 0x13a   : > { %v521_v27 = vpop.permute.xlu1 %520  ;;  %v519_v32 = vpop.permute.xlu0 %518 }
 0x13b   : > { %v2896_v10 = vsel %vm1126_vm3, %v2690_v44, %v521_v27  ;;  %v2900_v46 = vsel %vm1126_vm3, %v2693_v45, %v519_v32 }
 0x13c   : > { %3712 = vst [vmem:[#allocation26_spill] sm:$0xff] %v2896_v10  ;;  %1000 = vrot.lane.b32.xlu1 %v2419_v37, %s2108_s6  ;;  %968 = vrot.lane.b32.xlu0 %v2271_v17, %s2108_s6 }
 0x13e   : > { %v525_v47 = vpop.permute.xlu1 %524  ;;  %v523_v0 = vpop.permute.xlu0 %522 }
 0x13f   : > { %v2908_v56 = vsel %vm1126_vm3, %v2706_v54, %v525_v47  ;;  %v2912_v44 = vsel %vm1126_vm3, %v2709_v55, %v523_v0 }
 0x140   : > { %3713 = vst [vmem:[#allocation27_spill] sm:$0xff] %v2908_v56  ;;  %3714 = vst [vmem:[#allocation28_spill] sm:$0xff] %v2912_v44  ;;  %678 = vrot.lane.b32.xlu1 %v2251_v13, %s2105_s8  ;;  %614 = vrot.lane.b32.xlu0 %v2318_v26, %s2104_s7  ;;  %v3728_v56 = vld [vmem:[#allocation6_spill] sm:$0xff] }
 0x141   : > { %v3730_v44 = vld [vmem:[#allocation14_spill] sm:$0xff] }
 0x142   : > { %v529_v45 = vpop.permute.xlu1 %528  ;;  %v527_v11 = vpop.permute.xlu0 %526 }
 0x143   : > { %v2920_v27 = vsel %vm1126_vm3, %v2722_v39, %v529_v45  ;;  %v2924_v54 = vsel %vm1126_vm3, %v2725_v40, %v527_v11 }
 0x144   : > { %3715 = vst [vmem:[#allocation29_spill] sm:$0xff] %v2920_v27  ;;  %3716 = vst [vmem:[#allocation30_spill] sm:$0xff] %v2924_v54  ;;  %970 = vrot.lane.b32.xlu1 %v2268_v16, %s2108_s6  ;;  %710 = vrot.lane.b32.xlu0 %v2331_v29, %s2105_s8  ;;  %v3046_v54 = vld [vmem:[%s2191_s30 + $0x130] sm:$0xff] }
 0x146   : > { %v533_v13 = vpop.permute.xlu1 %532  ;;  %v531_v55 = vpop.permute.xlu0 %530 }
 0x147   : > { %v2932_v26 = vsel %vm1126_vm3, %v2738_v57, %v533_v13  ;;  %v2936_v39 = vsel %vm1126_vm3, %v2741_v38, %v531_v55 }
 0x148   : > { %3717 = vst [vmem:[#allocation31_spill] sm:$0xff] %v2932_v26  ;;  %3718 = vst [vmem:[#allocation32_spill] sm:$0xff] %v2936_v39  ;;  %680 = vrot.lane.b32.xlu1 %v2248_v12, %s2105_s8  ;;  %1002 = vrot.lane.b32.xlu0 %v2416_v36, %s2108_s6 }
 0x14a   : > { %v537_v40 = vpop.permute.xlu1 %536  ;;  %v535_v32 = vpop.permute.xlu0 %534 }
 0x14b   : > { %v2944_v47 = vsel %vm1126_vm3, %v2760_v59, %v537_v40  ;;  %v2948_v57 = vsel %vm1126_vm3, %v2763_v8, %v535_v32 }
 0x14c   : > { %3719 = vst [vmem:[#allocation33_spill] sm:$0xff] %v2944_v47  ;;  %3720 = vst [vmem:[#allocation34_spill] sm:$0xff] %v2948_v57  ;;  %776 = vrot.lane.b32.xlu1 %v2261_v15, %s2106_s9  ;;  %712 = vrot.lane.b32.xlu0 %v2328_v28, %s2105_s8 }
 0x14e   : > { %v2954_v12 = vpop.permute.xlu1 %574  ;;  %v2956_v38 = vpop.permute.xlu0 %572 }
 0x150   : > { %778 = vrot.lane.b32.xlu1 %v2258_v14, %s2106_s9  ;;  %808 = vrot.lane.b32.xlu0 %v2341_v31, %s2106_s9 }
 0x152   : > { %v2962_v59 = vpop.permute.xlu1 %578  ;;  %v2964_v8 = vpop.permute.xlu0 %576 }
 0x154   : > { %874 = vrot.lane.b32.xlu1 %v2271_v17, %s2107_s21  ;;  %810 = vrot.lane.b32.xlu0 %v2338_v30, %s2106_s9 }
 0x156   : > { %v2970_v0 = vpop.permute.xlu1 %582  ;;  %v2972_v45 = vpop.permute.xlu0 %580 }
 0x158   : > { %616 = vrot.lane.b32.xlu1 %v2331_v29, %s2104_s7  ;;  %906 = vrot.lane.b32.xlu0 %v2419_v37, %s2107_s21 }
 0x15a   : > { %v2978_v11 = vpop.permute.xlu1 %586  ;;  %v2980_v13 = vpop.permute.xlu0 %584 }
 0x15c   : > { %908 = vrot.lane.b32.xlu1 %v2416_v36, %s2107_s21  ;;  %876 = vrot.lane.b32.xlu0 %v2268_v16, %s2107_s21 }
 0x15e   : > { %v2986_v55 = vpop.permute.xlu1 %590  ;;  %v2988_v40 = vpop.permute.xlu0 %588 }
 0x15f   : > { %3721 = vst [vmem:[#allocation35_spill] sm:$0xff] %v2986_v55  ;;  %3722 = vst [vmem:[#allocation36_spill] sm:$0xff] %v2988_v40  ;;  %v1077_v55 = vsel %vm1060_vm0, %v2261_v15, %v3729_v25 }
 0x160   : > { %1004 = vrot.lane.b32.xlu1 %v2553_v52, %s2108_s6  ;;  %972 = vrot.lane.b32.xlu0 %v2281_v19, %s2108_s6  ;;  %v1110_v40 = vsel %vm1093_vm1, %v1077_v55, %v2653_v48 }
 0x162   : > { %v2994_v29 = vpop.permute.xlu1 %594  ;;  %v2996_v32 = vpop.permute.xlu0 %592 }
 0x163   : > { %3723 = vst [vmem:[#allocation37_spill] sm:$0xff] %v2994_v29  ;;  %3724 = vst [vmem:[#allocation38_spill] sm:$0xff] %v2996_v32  ;;  %v198_v29 = vld [vmem:[%s2191_s30] sm:$0xff] }
 0x164   : > { %682 = vrot.lane.b32.xlu1 %v2261_v15, %s2105_s8  ;;  %618 = vrot.lane.b32.xlu0 %v2328_v28, %s2104_s7  ;;  %v1143_v15 = vsel %vm1126_vm3, %v1110_v40, %v2868_v33  ;;  %v3731_v40 = vld [vmem:[#allocation8_spill] sm:$0xff] }
 0x166   : > { %v3002_v1 = vpop.permute.xlu1 %598  ;;  %v3004_v47 = vpop.permute.xlu0 %596 }
 0x167   : > { %3725 = vst [vmem:[#allocation39_spill] sm:$0xff] %v3002_v1  ;;  %3726 = vst [vmem:[#allocation40_spill] sm:$0xff] %v3004_v47 }
 0x168   : > { %974 = vrot.lane.b32.xlu1 %v2278_v18, %s2108_s6  ;;  %714 = vrot.lane.b32.xlu0 %v2341_v31, %s2105_s8 }
 0x16a   : > { %v605_v57 = vpop.permute.xlu1 %604  ;;  %v3010_v4 = vpop.permute.xlu0 %600 }
 0x16b   : > { %3727 = vst [vmem:[#allocation41_spill] sm:$0xff] %v3010_v4  ;;  %v1176_v61 = vsel %vm1159_vm4, %v1143_v15, %v605_v57  ;;  %v3733_v15 = vld [vmem:[#allocation9_spill] sm:$0xff] }
 0x16c   : > { %684 = vrot.lane.b32.xlu1 %v2258_v14, %s2105_s8  ;;  %1006 = vrot.lane.b32.xlu0 %v2550_v50, %s2108_s6 }
 0x16e   : > { %v671_v28 = vpop.permute.xlu1 %670  ;;  %v3016_v26 = vpop.permute.xlu0 %606 }
 0x170   : > { %780 = vrot.lane.b32.xlu1 %v2271_v17, %s2106_s9  ;;  %716 = vrot.lane.b32.xlu0 %v2338_v30, %s2105_s8 }
 0x172   : > { %v3022_v58 = vpop.permute.xlu1 %672  ;;  %v703_v1 = vpop.permute.xlu0 %702 }
 0x173   : > { %v1209_v48 = vsel %vm1192_vm5, %v1176_v61, %v703_v1 }
 0x174   : > { %782 = vrot.lane.b32.xlu1 %v2268_v16, %s2106_s9  ;;  %812 = vrot.lane.b32.xlu0 %v2419_v37, %s2106_s9 }
 0x176   : > { %v769_v4 = vpop.permute.xlu1 %768  ;;  %v3028_v39 = vpop.permute.xlu0 %704 }
 0x178   : > { %878 = vrot.lane.b32.xlu1 %v2281_v19, %s2107_s21  ;;  %814 = vrot.lane.b32.xlu0 %v2416_v36, %s2106_s9 }
 0x17a   : > { %v771_v2 = vpop.permute.xlu1 %770  ;;  %v801_v47 = vpop.permute.xlu0 %800 }
 0x17b   : > { %v1242_v33 = vsel %vm1225_vm6, %v1209_v48, %v801_v47  ;;  %v3094_v47 = vld [vmem:[%s2191_s30 + $0x138] sm:$0xff] }
 0x17c   : > { %620 = vrot.lane.b32.xlu1 %v2341_v31, %s2104_s7  ;;  %910 = vrot.lane.b32.xlu0 %v2553_v52, %s2107_s21  ;;  %v1061_v31 = vsel %vm1060_vm0, %v198_v29, %v3728_v56 }
 0x17d   : > { %v1094_v35 = vsel %vm1093_vm1, %v1061_v31, %v3730_v44 }
 0x17e   : > { %v867_v27 = vpop.permute.xlu1 %866  ;;  %v3038_v24 = vpop.permute.xlu0 %802  ;;  %v1127_v56 = vsel %vm1126_vm3, %v1094_v35, %v2774_v60  ;;  %v199_v60 = vld [vmem:[%s2191_s30 + $0x8] sm:$0xff] }
 0x17f   : > { %v1160_v10 = vsel %vm1159_vm4, %v1127_v56, %v2956_v38 }
 0x180   : > { %912 = vrot.lane.b32.xlu1 %v2550_v50, %s2107_s21  ;;  %880 = vrot.lane.b32.xlu0 %v2278_v18, %s2107_s21  ;;  %v1193_v44 = vsel %vm1192_vm5, %v1160_v10, %v671_v28 }
 0x181   : > { %v1226_v35 = vsel %vm1225_vm6, %v1193_v44, %v769_v4  ;;  %v3732_v4 = vld [vmem:[#allocation13_spill] sm:$0xff]  ;;  %v1078_v44 = vsel %vm1060_vm0, %v2258_v14, %v3733_v15 }
 0x182   : > { %v3048_v41 = vpop.permute.xlu1 %608  ;;  %v899_v32 = vpop.permute.xlu0 %898  ;;  %v1259_v57 = vsel %vm1258_vm7, %v1226_v35, %v867_v27 }
 0x183   : > { %v1275_v38 = vsel %vm1258_vm7, %v1242_v33, %v899_v32 }
 0x184   : > { %1008 = vrot.lane.b32.xlu1 %v3046_v54, %s2108_s6  ;;  %976 = vrot.lane.b32.xlu0 %v2291_v21, %s2108_s6 }
 0x186   : > { %v901_v25 = vpop.permute.xlu1 %900  ;;  %v869_v29 = vpop.permute.xlu0 %868 }
 0x188   : > { %686 = vrot.lane.b32.xlu1 %v2271_v17, %s2105_s8  ;;  %622 = vrot.lane.b32.xlu0 %v2338_v30, %s2104_s7  ;;  %v1062_v30 = vsel %vm1060_vm0, %v199_v60, %v3731_v40  ;;  %v3734_v40 = vld [vmem:[#allocation5_spill] sm:$0xff] }
 0x189   : > { %v1095_v27 = vsel %vm1093_vm1, %v1062_v30, %v3732_v4  ;;  %v3735_v30 = vld [vmem:[#allocation12_spill] sm:$0xff] }
 0x18a   : > { %v997_v10 = vpop.permute.xlu1 %996  ;;  %v965_v55 = vpop.permute.xlu0 %964  ;;  %v1128_v32 = vsel %vm1126_vm3, %v1095_v27, %v2772_v3  ;;  %v1111_v3 = vsel %vm1093_vm1, %v1078_v44, %v2651_v42  ;;  %v1079_v4 = vsel %vm1060_vm0, %v2271_v17, %v3735_v30 }
 0x18b   : > { %v1292_v61 = vsel %vm1291_vm8, %v1259_v57, %v965_v55  ;;  %v1308_v1 = vsel %vm1291_vm8, %v1275_v38, %v997_v10  ;;  %v1161_v56 = vsel %vm1159_vm4, %v1128_v32, %v2954_v12  ;;  %v1144_v12 = vsel %vm1126_vm3, %v1111_v3, %v2866_v5 }
 0x18c   : > { %978 = vrot.lane.b32.xlu1 %v2288_v20, %s2108_s6  ;;  %718 = vrot.lane.b32.xlu0 %v2419_v37, %s2105_s8  ;;  %v1194_v48 = vsel %vm1192_vm5, %v1161_v56, %v3022_v58  ;;  %v1177_v58 = vsel %vm1159_vm4, %v1144_v12, %v3016_v26  ;;  %v1112_v32 = vsel %vm1093_vm1, %v1079_v4, %v2661_v43 }
 0x18d   : > { %1886 = vmatprep.mubr.msk.f32.mxu0 %vm1336_vm9, %v1292_v61  ;;  %1910 = vmatprep.mubr.msk.f32.mxu1 %vm1336_vm9, %v1308_v1  ;;  %v1227_v60 = vsel %vm1225_vm6, %v1194_v48, %v771_v2  ;;  %v1210_v57 = vsel %vm1192_vm5, %v1177_v58, %v3028_v39  ;;  %v2009_v1 = vld [vmem:[%s2191_s30 + $0x10] sm:$0xff]  ;;  %v1145_v15 = vsel %vm1126_vm3, %v1112_v32, %v2876_v7 }
 0x18e   : > { %v675_v28 = vpop.permute.xlu1 %674  ;;  %v3098_v31 = vpop.permute.xlu0 %610  ;;  %v1260_v35 = vsel %vm1258_vm7, %v1227_v60, %v869_v29  ;;  %v1243_v42 = vsel %vm1225_vm6, %v1210_v57, %v3038_v24  ;;  %v3738_v58 = vld [vmem:[#allocation15_spill] sm:$0xff]  ;;  %v3206_v57 = vld [vmem:[%s2191_s30 + $0x148] sm:$0xff] }
 0x18f   : > { %v1276_v2 = vsel %vm1258_vm7, %v1243_v42, %v901_v25 }
 0x190   : > { %688 = vrot.lane.b32.xlu1 %v2268_v16, %s2105_s8  ;;  %1010 = vrot.lane.b32.xlu0 %v3094_v47, %s2108_s6 }
 0x192   : > { %v967_v14 = vpop.permute.xlu1 %966  ;;  %v707_v33 = vpop.permute.xlu0 %706 }
 0x193   : > { %v1293_v16 = vsel %vm1291_vm8, %v1260_v35, %v967_v14  ;;  %v3737_v14 = vld [vmem:[#allocation7_spill] sm:$0xff] }
 0x194   : > { %784 = vrot.lane.b32.xlu1 %v2281_v19, %s2106_s9  ;;  %720 = vrot.lane.b32.xlu0 %v2416_v36, %s2105_s8 }
 0x195   : > { %1887 = vmatmul.mubr.msk.f32.vlgmr.msra.gmra.mxu0 %vm1336_vm9, %v1293_v16 }
 0x196   : > { %v677_v5 = vpop.permute.xlu1 %676  ;;  %v999_v26 = vpop.permute.xlu0 %998 }
 0x197   : > { %v1309_v29 = vsel %vm1291_vm8, %v1276_v2, %v999_v26 }
 0x198   : > { %786 = vrot.lane.b32.xlu1 %v2278_v18, %s2106_s9  ;;  %816 = vrot.lane.b32.xlu0 %v2553_v52, %s2106_s9 }
 0x199   : > { %1911 = vmatmul.mubr.msk.f32.vlgmr.msra.gmra.mxu1 %vm1336_vm9, %v1309_v29 }
 0x19a   : > { %v773_v39 = vpop.permute.xlu1 %772  ;;  %v3136_v24 = vpop.permute.xlu0 %708 }
 0x19c   : > { %882 = vrot.lane.b32.xlu1 %v2291_v21, %s2107_s21  ;;  %818 = vrot.lane.b32.xlu0 %v2550_v50, %s2106_s9  ;;  %v3153_v21 = vld [vmem:[%s2191_s30 + $0x140] sm:$0xff] }
 0x19e   : > { %v775_v25 = vpop.permute.xlu1 %774  ;;  %v805_v38 = vpop.permute.xlu0 %804 }
 0x1a0   : > { %624 = vrot.lane.b32.xlu1 %v2419_v37, %s2104_s7  ;;  %914 = vrot.lane.b32.xlu0 %v3046_v54, %s2107_s21  ;;  %v1063_v37 = vsel %vm1060_vm0, %v2009_v1, %v3734_v40  ;;  %v2013_v1 = vld [vmem:[%s2191_s30 + $0xa8] sm:$0xff] }
 0x1a2   : > { %v871_v18 = vpop.permute.xlu1 %870  ;;  %v3146_v10 = vpop.permute.xlu0 %806 }
 0x1a4   : > { %916 = vrot.lane.b32.xlu1 %v3094_v47, %s2107_s21  ;;  %884 = vrot.lane.b32.xlu0 %v2288_v20, %s2107_s21  ;;  %v3736_v20 = vld [vmem:[#allocation16_spill] sm:$0xff] }
 0x1a5   : > { %v1096_v27 = vsel %vm1093_vm1, %v1063_v37, %v3736_v20 }
 0x1a6   : > { %v3155_v55 = vpop.permute.xlu1 %612  ;;  %v903_v61 = vpop.permute.xlu0 %902  ;;  %v1129_v56 = vsel %vm1126_vm3, %v1096_v27, %v2788_v63 }
 0x1a7   : > { %v1162_v48 = vsel %vm1159_vm4, %v1129_v56, %v2964_v8 }
 0x1a8   : > { %1012 = vrot.lane.b32.xlu1 %v3153_v21, %s2108_s6  ;;  %980 = vrot.lane.b32.xlu0 %v2301_v23, %s2108_s6  ;;  %v1178_v23 = vsel %vm1159_vm4, %v1145_v15, %v3048_v41  ;;  %v1195_v3 = vsel %vm1192_vm5, %v1162_v48, %v675_v28  ;;  %v3243_v15 = vld [vmem:[%s2191_s30 + $0xb8] sm:$0xff] }
 0x1a9   : > { %v1211_v43 = vsel %vm1192_vm5, %v1178_v23, %v707_v33  ;;  %v1228_v63 = vsel %vm1225_vm6, %v1195_v3, %v773_v39  ;;  %v3195_v33 = vld [vmem:[%s2191_s30 + $0xc8] sm:$0xff]  ;;  %v2012_v39 = vld [vmem:[%s2191_s30 + $0x98] sm:$0xff] }
 0x1aa   : > { %v905_v44 = vpop.permute.xlu1 %904  ;;  %v873_v17 = vpop.permute.xlu0 %872  ;;  %v1244_v7 = vsel %vm1225_vm6, %v1211_v43, %v805_v38  ;;  %v1261_v8 = vsel %vm1258_vm7, %v1228_v63, %v871_v18  ;;  %v3739_v38 = vld [vmem:[#allocation11_spill] sm:$0xff] }
 0x1ab   : > { %v1277_v60 = vsel %vm1258_vm7, %v1244_v7, %v903_v61  ;;  %v1080_v18 = vsel %vm1060_vm0, %v2012_v39, %v3739_v38  ;;  %v3266_v43 = vld [vmem:[%s2191_s30 + $0x150] sm:$0xff] }
 0x1ac   : > { %690 = vrot.lane.b32.xlu1 %v2281_v19, %s2105_s8  ;;  %626 = vrot.lane.b32.xlu0 %v2416_v36, %s2104_s7  ;;  %v2010_v19 = vld [vmem:[%s2191_s30 + $0x18] sm:$0xff] }
 0x1ad   : > { %v1064_v36 = vsel %vm1060_vm0, %v2010_v19, %v3737_v14 }
 0x1ae   : > { %v1001_v41 = vpop.permute.xlu1 %1000  ;;  %v969_v12 = vpop.permute.xlu0 %968  ;;  %v1097_v16 = vsel %vm1093_vm1, %v1064_v36, %v3738_v58 }
 0x1af   : > { %v1310_v28 = vsel %vm1291_vm8, %v1277_v60, %v1001_v41  ;;  %v1294_v35 = vsel %vm1291_vm8, %v1261_v8, %v969_v12  ;;  %v1130_v42 = vsel %vm1126_vm3, %v1097_v16, %v2786_v62  ;;  %v1113_v62 = vsel %vm1093_vm1, %v1080_v18, %v2659_v49  ;;  %v2014_v49 = vld [vmem:[%s2191_s30 + $0xb0] sm:$0xff]  ;;  %v3295_v16 = vld [vmem:[%s2191_s30 + $0xd8] sm:$0xff] }
 0x1b0   : > { %982 = vrot.lane.b32.xlu1 %v3195_v33, %s2108_s6  ;;  %722 = vrot.lane.b32.xlu0 %v2553_v52, %s2105_s8  ;;  %v1163_v29 = vsel %vm1159_vm4, %v1130_v42, %v2962_v59  ;;  %v1146_v59 = vsel %vm1126_vm3, %v1113_v62, %v2874_v6  ;;  %v1164_v41 = vsel %vm1159_vm4, %v2800_v22, %v2972_v45 }
 0x1b1   : > { %1889 = vmatprep.mubr.msk.f32.mxu0 %vm1336_vm9, %v1294_v35  ;;  %1913 = vmatprep.mubr.msk.f32.mxu1 %vm1336_vm9, %v1310_v28  ;;  %v1196_v61 = vsel %vm1192_vm5, %v1163_v29, %v677_v5  ;;  %v1179_v5 = vsel %vm1159_vm4, %v1146_v59, %v3098_v31  ;;  %v1180_v12 = vsel %vm1159_vm4, %v2888_v53, %v3155_v55 }
 0x1b2   : > { %v679_v2 = vpop.permute.xlu1 %678  ;;  %v3210_v26 = vpop.permute.xlu0 %614  ;;  %v1229_v40 = vsel %vm1225_vm6, %v1196_v61, %v775_v25  ;;  %v1212_v27 = vsel %vm1192_vm5, %v1179_v5, %v3136_v24  ;;  %v1165_v29 = vsel %vm1159_vm4, %v2796_v9, %v2970_v0 }
 0x1b3   : > { %v1262_v37 = vsel %vm1258_vm7, %v1229_v40, %v873_v17  ;;  %v1245_v6 = vsel %vm1225_vm6, %v1212_v27, %v3146_v10  ;;  %v3251_v17 = vld [vmem:[%s2191_s30 + $0xc0] sm:$0xff]  ;;  %v1197_v28 = vsel %vm1192_vm5, %v1164_v41, %v679_v2  ;;  %v1181_v62 = vsel %vm1159_vm4, %v2884_v34, %v3210_v26 }
 0x1b4   : > { %692 = vrot.lane.b32.xlu1 %v2013_v1, %s2105_s8  ;;  %1014 = vrot.lane.b32.xlu0 %v3206_v57, %s2108_s6  ;;  %v1278_v25 = vsel %vm1258_vm7, %v1245_v6, %v905_v44  ;;  %v242_v6 = vld [vmem:[%s2191_s30 + $0x160] sm:$0xff] }
 0x1b5   : > { %v3740_v41 = vld [vmem:[#allocation17_spill] sm:$0xff] }
 0x1b6   : > { %v971_v30 = vpop.permute.xlu1 %970  ;;  %v711_v4 = vpop.permute.xlu0 %710 }
 0x1b7   : > { %v1295_v20 = vsel %vm1291_vm8, %v1262_v37, %v971_v30  ;;  %v1213_v35 = vsel %vm1192_vm5, %v1180_v12, %v711_v4  ;;  %v1167_v12 = vsel %vm1159_vm4, %v3740_v41, %v2978_v11 }
 0x1b8   : > { %788 = vrot.lane.b32.xlu1 %v2014_v49, %s2106_s9  ;;  %724 = vrot.lane.b32.xlu0 %v2550_v50, %s2105_s8 }
 0x1b9   : > { %1890 = vmatmul.mubr.msk.f32.gmra.mxu0 %vm1336_vm9, %v1295_v20 }
 0x1ba   : > { %v681_v31 = vpop.permute.xlu1 %680  ;;  %v1003_v32 = vpop.permute.xlu0 %1002 }
 0x1bb   : > { %v1311_v56 = vsel %vm1291_vm8, %v1278_v25, %v1003_v32  ;;  %v1198_v39 = vsel %vm1192_vm5, %v1165_v29, %v681_v31  ;;  %v2019_v32 = vld [vmem:[%s2191_s30 + $0xe0] sm:$0xff] }
 0x1bc   : > { %790 = vrot.lane.b32.xlu1 %v3243_v15, %s2106_s9  ;;  %820 = vrot.lane.b32.xlu0 %v3046_v54, %s2106_s9 }
 0x1bd   : > { %1914 = vmatmul.mubr.msk.f32.gmra.mxu1 %vm1336_vm9, %v1311_v56 }
 0x1be   : > { %v777_v24 = vpop.permute.xlu1 %776  ;;  %v713_v10 = vpop.permute.xlu0 %712 }
 0x1bf   : > { %v1230_v19 = vsel %vm1225_vm6, %v1197_v28, %v777_v24  ;;  %v1214_v0 = vsel %vm1192_vm5, %v1181_v62, %v713_v10  ;;  %v1166_v24 = vsel %vm1159_vm4, %v2812_v51, %v2980_v13 }
 0x1c0   : > { %886 = vrot.lane.b32.xlu1 %v3251_v17, %s2107_s21  ;;  %822 = vrot.lane.b32.xlu0 %v3094_v47, %s2106_s9 }
 0x1c2   : > { %v779_v44 = vpop.permute.xlu1 %778  ;;  %v809_v48 = vpop.permute.xlu0 %808 }
 0x1c3   : > { %v1246_v14 = vsel %vm1225_vm6, %v1213_v35, %v809_v48  ;;  %v1231_v38 = vsel %vm1225_vm6, %v1198_v39, %v779_v44 }
 0x1c4   : > { %628 = vrot.lane.b32.xlu1 %v2553_v52, %s2104_s7  ;;  %918 = vrot.lane.b32.xlu0 %v3153_v21, %s2107_s21  ;;  %v3273_v52 = vld [vmem:[%s2191_s30 + $0xd0] sm:$0xff] }
 0x1c6   : > { %v875_v23 = vpop.permute.xlu1 %874  ;;  %v811_v3 = vpop.permute.xlu0 %810 }
 0x1c7   : > { %v1263_v22 = vsel %vm1258_vm7, %v1230_v19, %v875_v23  ;;  %v1247_v40 = vsel %vm1225_vm6, %v1214_v0, %v811_v3  ;;  %v3743_v0 = vld [vmem:[#allocation19_spill] sm:$0xff] }
 0x1c8   : > { %920 = vrot.lane.b32.xlu1 %v3206_v57, %s2107_s21  ;;  %888 = vrot.lane.b32.xlu0 %v3195_v33, %s2107_s21 }
 0x1ca   : > { %v3268_v63 = vpop.permute.xlu1 %616  ;;  %v907_v7 = vpop.permute.xlu0 %906 }
 0x1cb   : > { %v1279_v45 = vsel %vm1258_vm7, %v1246_v14, %v907_v7  ;;  %v1182_v10 = vsel %vm1159_vm4, %v2900_v46, %v3268_v63 }
 0x1cc   : > { %1016 = vrot.lane.b32.xlu1 %v3266_v43, %s2108_s6  ;;  %984 = vrot.lane.b32.xlu0 %v3273_v52, %s2108_s6 }
 0x1ce   : > { %v909_v8 = vpop.permute.xlu1 %908  ;;  %v877_v60 = vpop.permute.xlu0 %876 }
 0x1cf   : > { %v1264_v18 = vsel %vm1258_vm7, %v1231_v38, %v877_v60  ;;  %v1280_v59 = vsel %vm1258_vm7, %v1247_v40, %v909_v8  ;;  %v244_v38 = vld [vmem:[%s2191_s30 + $0x170] sm:$0xff] }
 0x1d0   : > { %694 = vrot.lane.b32.xlu1 %v2014_v49, %s2105_s8  ;;  %630 = vrot.lane.b32.xlu0 %v2550_v50, %s2104_s7  ;;  %v3304_v50 = vld [vmem:[%s2191_s30 + $0x158] sm:$0xff] }
 0x1d2   : > { %v1005_v36 = vpop.permute.xlu1 %1004  ;;  %v973_v53 = vpop.permute.xlu0 %972 }
 0x1d3   : > { %v1312_v55 = vsel %vm1291_vm8, %v1279_v45, %v1005_v36  ;;  %v1296_v58 = vsel %vm1291_vm8, %v1263_v22, %v973_v53  ;;  %v3741_v22 = vld [vmem:[#allocation26_spill] sm:$0xff] }
 0x1d4   : > { %986 = vrot.lane.b32.xlu1 %v3295_v16, %s2108_s6  ;;  %726 = vrot.lane.b32.xlu0 %v3046_v54, %s2105_s8 }
 0x1d5   : > { %1892 = vmatprep.mubr.msk.f32.mxu0 %vm1336_vm9, %v1296_v58  ;;  %1916 = vmatprep.mubr.msk.f32.mxu1 %vm1336_vm9, %v1312_v55 }
 0x1d6   : > { %v683_v42 = vpop.permute.xlu1 %682  ;;  %v3306_v2 = vpop.permute.xlu0 %618 }
 0x1d7   : > { %v1199_v44 = vsel %vm1192_vm5, %v1166_v24, %v683_v42  ;;  %v1183_v45 = vsel %vm1159_vm4, %v3741_v22, %v3306_v2  ;;  %v3746_v24 = vld [vmem:[#allocation18_spill] sm:$0xff] }
 0x1d8   : > { %696 = vrot.lane.b32.xlu1 %v3243_v15, %s2105_s8  ;;  %1018 = vrot.lane.b32.xlu0 %v3304_v50, %s2108_s6 }
 0x1da   : > { %v975_v61 = vpop.permute.xlu1 %974  ;;  %v715_v1 = vpop.permute.xlu0 %714 }
 0x1db   : > { %v1297_v9 = vsel %vm1291_vm8, %v1264_v18, %v975_v61  ;;  %v1215_v48 = vsel %vm1192_vm5, %v1182_v10, %v715_v1  ;;  %v2021_v61 = vld [vmem:[%s2191_s30 + $0xf0] sm:$0xff] }
 0x1dc   : > { %792 = vrot.lane.b32.xlu1 %v3251_v17, %s2106_s9  ;;  %728 = vrot.lane.b32.xlu0 %v3094_v47, %s2105_s8 }
 0x1dd   : > { %1893 = vmatmul.mubr.msk.f32.gmra.mxu0 %vm1336_vm9, %v1297_v9  ;;  %v3742_v9 = vld [vmem:[#allocation36_spill] sm:$0xff] }
 0x1de   : > { %v685_v37 = vpop.permute.xlu1 %684  ;;  %v1007_v30 = vpop.permute.xlu0 %1006  ;;  %v1168_v40 = vsel %vm1159_vm4, %v3743_v0, %v3742_v9 }
 0x1df   : > { %v1313_v34 = vsel %vm1291_vm8, %v1280_v59, %v1007_v30  ;;  %v1200_v28 = vsel %vm1192_vm5, %v1167_v12, %v685_v37  ;;  %v3744_v59 = vld [vmem:[#allocation28_spill] sm:$0xff] }
 0x1e0   : > { %794 = vrot.lane.b32.xlu1 %v3195_v33, %s2106_s9  ;;  %824 = vrot.lane.b32.xlu0 %v3153_v21, %s2106_s9 }
 0x1e1   : > { %1917 = vmatmul.mubr.msk.f32.gmra.mxu1 %vm1336_vm9, %v1313_v34 }
 0x1e2   : > { %v781_v26 = vpop.permute.xlu1 %780  ;;  %v717_v4 = vpop.permute.xlu0 %716 }
 0x1e3   : > { %v1232_v23 = vsel %vm1225_vm6, %v1199_v44, %v781_v26  ;;  %v1216_v11 = vsel %vm1192_vm5, %v1183_v45, %v717_v4  ;;  %v2022_v26 = vld [vmem:[%s2191_s30 + $0xf8] sm:$0xff] }
 0x1e4   : > { %890 = vrot.lane.b32.xlu1 %v3273_v52, %s2107_s21  ;;  %826 = vrot.lane.b32.xlu0 %v3206_v57, %s2106_s9 }
 0x1e6   : > { %v783_v5 = vpop.permute.xlu1 %782  ;;  %v813_v20 = vpop.permute.xlu0 %812 }
 0x1e7   : > { %v1248_v3 = vsel %vm1225_vm6, %v1215_v48, %v813_v20 }
 0x1e8   : > { %632 = vrot.lane.b32.xlu1 %v3046_v54, %s2104_s7  ;;  %922 = vrot.lane.b32.xlu0 %v3266_v43, %s2107_s21 }
 0x1ea   : > { %v879_v27 = vpop.permute.xlu1 %878  ;;  %v815_v49 = vpop.permute.xlu0 %814 }
 0x1eb   : > { %v1265_v51 = vsel %vm1258_vm7, %v1232_v23, %v879_v27  ;;  %v1249_v53 = vsel %vm1225_vm6, %v1216_v11, %v815_v49  ;;  %v3748_v11 = vld [vmem:[#allocation38_spill] sm:$0xff] }
 0x1ec   : > { %924 = vrot.lane.b32.xlu1 %v3304_v50, %s2107_s21  ;;  %892 = vrot.lane.b32.xlu0 %v3295_v16, %s2107_s21 }
 0x1ee   : > { %v3349_v25 = vpop.permute.xlu1 %620  ;;  %v911_v31 = vpop.permute.xlu0 %910 }
 0x1ef   : > { %v1281_v46 = vsel %vm1258_vm7, %v1248_v3, %v911_v31  ;;  %v1184_v37 = vsel %vm1159_vm4, %v3744_v59, %v3349_v25 }
 0x1f0   : > { %1020 = vrot.lane.b32.xlu1 %v242_v6, %s2108_s6  ;;  %988 = vrot.lane.b32.xlu0 %v2019_v32, %s2108_s6 }
 0x1f2   : > { %v913_v54 = vpop.permute.xlu1 %912  ;;  %v881_v56 = vpop.permute.xlu0 %880 }
 0x1f3   : > { %v1282_v55 = vsel %vm1258_vm7, %v1249_v53, %v913_v54  ;;  %v3749_v53 = vld [vmem:[#allocation21_spill] sm:$0xff] }
 0x1f4   : > { %634 = vrot.lane.b32.xlu1 %v3094_v47, %s2104_s7  ;;  %602 = vrot.lane.b32.xlu0 %v3243_v15, %s2104_s7  ;;  %v243_v47 = vld [vmem:[%s2191_s30 + $0x168] sm:$0xff] }
 0x1f6   : > { %v1009_v13 = vpop.permute.xlu1 %1008  ;;  %v977_v63 = vpop.permute.xlu0 %976 }
 0x1f7   : > { %v1314_v7 = vsel %vm1291_vm8, %v1281_v46, %v1009_v13  ;;  %v1298_v8 = vsel %vm1291_vm8, %v1265_v51, %v977_v63  ;;  %v3747_v46 = vld [vmem:[#allocation27_spill] sm:$0xff] }
 0x1f8   : > { %730 = vrot.lane.b32.xlu1 %v3153_v21, %s2105_s8  ;;  %698 = vrot.lane.b32.xlu0 %v3251_v17, %s2105_s8  ;;  %v2020_v21 = vld [vmem:[%s2191_s30 + $0xe8] sm:$0xff]  ;;  %v1233_v17 = vsel %vm1225_vm6, %v1200_v28, %v783_v5 }
 0x1f9   : > { %1895 = vmatprep.mubr.msk.f32.mxu0 %vm1336_vm9, %v1298_v8  ;;  %1919 = vmatprep.mubr.msk.f32.mxu1 %vm1336_vm9, %v1314_v7  ;;  %v1266_v35 = vsel %vm1258_vm7, %v1233_v17, %v881_v56  ;;  %v3745_v56 = vld [vmem:[#allocation35_spill] sm:$0xff] }
 0x1fa   : > { %v687_v15 = vpop.permute.xlu1 %686  ;;  %v3379_v60 = vpop.permute.xlu0 %622  ;;  %v1169_v10 = vsel %vm1159_vm4, %v3746_v24, %v3745_v56  ;;  %v3496_v24 = vld [vmem:[%s3687_s2] ss:$0 sm:$0xff] }
 0x1fb   : > { %v1201_v30 = vsel %vm1192_vm5, %v1168_v40, %v687_v15  ;;  %v1185_v13 = vsel %vm1159_vm4, %v3747_v46, %v3379_v60 }
 0x1fc   : > { %1022 = vrot.lane.b32.xlu1 %v243_v47, %s2108_s6  ;;  %990 = vrot.lane.b32.xlu0 %v2020_v21, %s2108_s6 }
 0x1fe   : > { %v979_v19 = vpop.permute.xlu1 %978  ;;  %v719_v14 = vpop.permute.xlu0 %718 }
 0x1ff   : > { %v1299_v36 = vsel %vm1291_vm8, %v1266_v35, %v979_v19  ;;  %v1217_v34 = vsel %vm1192_vm5, %v1184_v37, %v719_v14 }
 0x200   : > { %732 = vrot.lane.b32.xlu1 %v3206_v57, %s2105_s8  ;;  %700 = vrot.lane.b32.xlu0 %v3195_v33, %s2105_s8 }
 0x201   : > { %1896 = vmatmul.mubr.msk.f32.gmra.mxu0 %vm1336_vm9, %v1299_v36 }
 0x202   : > { %v689_v58 = vpop.permute.xlu1 %688  ;;  %v1011_v42 = vpop.permute.xlu0 %1010 }
 0x203   : > { %v1315_v2 = vsel %vm1291_vm8, %v1282_v55, %v1011_v42  ;;  %v1202_v44 = vsel %vm1192_vm5, %v1169_v10, %v689_v58  ;;  %v1170_v55 = vsel %vm1159_vm4, %v3749_v53, %v3748_v11  ;;  %v3750_v58 = vld [vmem:[#allocation30_spill] sm:$0xff] }
 0x204   : > { %828 = vrot.lane.b32.xlu1 %v3266_v43, %s2106_s9  ;;  %796 = vrot.lane.b32.xlu0 %v3273_v52, %s2106_s9 }
 0x205   : > { %1920 = vmatmul.mubr.msk.f32.gmra.mxu1 %vm1336_vm9, %v1315_v2 }
 0x206   : > { %v785_v33 = vpop.permute.xlu1 %784  ;;  %v721_v57 = vpop.permute.xlu0 %720 }
 0x207   : > { %v1234_v4 = vsel %vm1225_vm6, %v1201_v30, %v785_v33  ;;  %v1218_v7 = vsel %vm1192_vm5, %v1185_v13, %v721_v57 }
 0x208   : > { %830 = vrot.lane.b32.xlu1 %v3304_v50, %s2106_s9  ;;  %798 = vrot.lane.b32.xlu0 %v3295_v16, %s2106_s9  ;;  %v245_v16 = vld [vmem:[%s2191_s30 + $0x178] sm:$0xff]  ;;  %s185_s30 = sand.u32 1, %s2083_s13  }
 0x209   : > { %s1797_s7 = sshll.u32 %s185_s30, 8  ;;  %s3639_s15 = scalar_lea.sflag [#allocation3], %s185_s30 }
 0x20a   : > { %v787_v29 = vpop.permute.xlu1 %786  ;;  %v817_v39 = vpop.permute.xlu0 %816  ;;  %s3499_s10 = scalar_lea.vmem [#allocation2], %s1797_s7 }
 0x20b   : > { %v1250_v5 = vsel %vm1225_vm6, %v1217_v34, %v817_v39  ;;  %v1235_v48 = vsel %vm1225_vm6, %v1202_v44, %v787_v29  ;;  %v3753_v34 = vld [vmem:[#allocation29_spill] sm:$0xff]  ;;  %s1710_s18 = sshll.u32 %s3499_s10, 4  ;;  %s3633_s18 = int_to_ptr.vmem [resolvable:$true] %s1710_s18 }
 0x20c   : > { %926 = vrot.lane.b32.xlu1 %v242_v6, %s2107_s21  ;;  %894 = vrot.lane.b32.xlu0 %v2019_v32, %s2107_s21  ;;  %s2023_s26 = scalar_lea.vmem %s3633_s18, 4096  ;;  %p2030_p1 = scmp.lt.s32.totalorder %s3633_s18, %s2028_s28 }
 0x20d   : > { %p2024_p12 = scmp.ne.s32.totalorder %s3633_s18, %s2023_s26  ;;  %p2031_p2 = scmp.lt.s32.totalorder %s2029_s29, %s2023_s26 }
 0x20e   : > { %v883_v43 = vpop.permute.xlu1 %882  ;;  %v819_v52 = vpop.permute.xlu0 %818 }
 0x20f   : > { %v1267_v20 = vsel %vm1258_vm7, %v1234_v4, %v883_v43  ;;  %v1251_v8 = vsel %vm1225_vm6, %v1218_v7, %v819_v52  ;;  %p2025_p13 = pnand %p2024_p12, %p2171_p4  ;;  %p2032_p3 = por %p2031_p2, %p2030_p1 }
 0x210   : > { %928 = vrot.lane.b32.xlu1 %v243_v47, %s2107_s21  ;;  %896 = vrot.lane.b32.xlu0 %v2020_v21, %s2107_s21 }
 0x211   : > { %p2026_p0 = pneg %p2025_p13 }
 0x212   : > { %v625_v18 = vpop.permute.xlu1 %624  ;;  %v915_v50 = vpop.permute.xlu0 %914 }
 0x213   : > { %v1283_v27 = vsel %vm1258_vm7, %v1250_v5, %v915_v50  ;;  %v1186_v42 = vsel %vm1159_vm4, %v3750_v58, %v625_v18  ;;  %p2033_p5 = pnand %p2032_p3, %p2026_p0 }
 0x214   : > { %1024 = vrot.lane.b32.xlu1 %v244_v38, %s2108_s6  ;;  %992 = vrot.lane.b32.xlu0 %v2021_v61, %s2108_s6 }
 0x216   : > { %v917_v1 = vpop.permute.xlu1 %916  ;;  %v885_v62 = vpop.permute.xlu0 %884 }
 0x217   : > { %v1268_v23 = vsel %vm1258_vm7, %v1235_v48, %v885_v62  ;;  %v1284_v47 = vsel %vm1258_vm7, %v1251_v8, %v917_v1  ;;  %v3751_v1 = vld [vmem:[#allocation37_spill] sm:$0xff]  ;;  %v3752_v62 = vld [vmem:[#allocation20_spill] sm:$0xff] }
 0x218   : > { %1026 = vrot.lane.b32.xlu1 %v245_v16, %s2108_s6  ;;  %994 = vrot.lane.b32.xlu0 %v2022_v26, %s2108_s6  ;;  %v1171_v9 = vsel %vm1159_vm4, %v3752_v62, %v3751_v1 }
 0x21a   : > { %v1013_v49 = vpop.permute.xlu1 %1012  ;;  %v981_v6 = vpop.permute.xlu0 %980 }
 0x21b   : > { %v1316_v25 = vsel %vm1291_vm8, %v1283_v27, %v1013_v49  ;;  %v1300_v31 = vsel %vm1291_vm8, %v1267_v20, %v981_v6 }
 0x21c   : > { %1898 = vmatprep.mubr.msk.f32.mxu0 %vm1336_vm9, %v1300_v31  ;;  %1922 = vmatprep.mubr.msk.f32.mxu1 %vm1336_vm9, %v1316_v25 }
 0x21e   : > { %v691_v32 = vpop.permute.xlu1 %690  ;;  %v627_v54 = vpop.permute.xlu0 %626 }
 0x21f   : > { %v1203_v2 = vsel %vm1192_vm5, %v1170_v55, %v691_v32  ;;  %v1187_v26 = vsel %vm1159_vm4, %v3753_v34, %v627_v54 }
 0x222   : > { %v983_v3 = vpop.permute.xlu1 %982  ;;  %v723_v51 = vpop.permute.xlu0 %722 }
 0x223   : > { %v1301_v63 = vsel %vm1291_vm8, %v1268_v23, %v983_v3  ;;  %v1219_v33 = vsel %vm1192_vm5, %v1186_v42, %v723_v51 }
 0x224   : > { %1899 = vmatmul.mubr.msk.f32.gmra.mxu0 %vm1336_vm9, %v1301_v63 }
 0x226   : > { %v693_v15 = vpop.permute.xlu1 %692  ;;  %v1015_v41 = vpop.permute.xlu0 %1014 }
 0x227   : > { %v1317_v12 = vsel %vm1291_vm8, %v1284_v47, %v1015_v41  ;;  %v1204_v0 = vsel %vm1192_vm5, %v1171_v9, %v693_v15 }
 0x228   : > { %1923 = vmatmul.mubr.msk.f32.gmra.mxu1 %vm1336_vm9, %v1317_v12  ;;  %v3754_v12 = vld [vmem:[#allocation40_spill] sm:$0xff] }
 0x22a   : > { %v789_v28 = vpop.permute.xlu1 %788  ;;  %v725_v21 = vpop.permute.xlu0 %724 }
 0x22b   : > { %v1236_v57 = vsel %vm1225_vm6, %v1203_v2, %v789_v28  ;;  %v1220_v5 = vsel %vm1192_vm5, %v1187_v26, %v725_v21  ;;  %v3755_v28 = vld [vmem:[#allocation23_spill] sm:$0xff] }
 0x22c   : > { %v1172_v21 = vsel %vm1159_vm4, %v3755_v28, %v3754_v12 }
 0x22e   : > { %v791_v17 = vpop.permute.xlu1 %790  ;;  %v821_v60 = vpop.permute.xlu0 %820 }
 0x22f   : > { %v1252_v29 = vsel %vm1225_vm6, %v1219_v33, %v821_v60  ;;  %v1237_v40 = vsel %vm1225_vm6, %v1204_v0, %v791_v17  ;;  %v3756_v17 = vld [vmem:[#allocation32_spill] sm:$0xff] }
 0x232   : > { %v887_v35 = vpop.permute.xlu1 %886  ;;  %v823_v19 = vpop.permute.xlu0 %822 }
 0x233   : > { %v1269_v39 = vsel %vm1258_vm7, %v1236_v57, %v887_v35  ;;  %v1253_v20 = vsel %vm1225_vm6, %v1220_v5, %v823_v19 }
 0x236   : > { %v3456_v14 = vpop.permute.xlu1 %628  ;;  %v919_v22 = vpop.permute.xlu0 %918 }
 0x237   : > { %v1285_v43 = vsel %vm1258_vm7, %v1252_v29, %v919_v22  ;;  %v1188_v60 = vsel %vm1159_vm4, %v3756_v17, %v3456_v14  ;;  %v3757_v29 = vld [vmem:[#allocation39_spill] sm:$0xff]  ;;  %v3763_v17 = vld [vmem:[#allocation33_spill] sm:$0xff] }
 0x23a   : > { %v921_v45 = vpop.permute.xlu1 %920  ;;  %v889_v36 = vpop.permute.xlu0 %888 }
 0x23b   : > { %v1270_v59 = vsel %vm1258_vm7, %v1237_v40, %v889_v36  ;;  %v1286_v27 = vsel %vm1258_vm7, %v1253_v20, %v921_v45 }
 0x23e   : > { %v1017_v52 = vpop.permute.xlu1 %1016  ;;  %v985_v38 = vpop.permute.xlu0 %984 }
 0x23f   : > { %v1318_v50 = vsel %vm1291_vm8, %v1285_v43, %v1017_v52  ;;  %v1302_v61 = vsel %vm1291_vm8, %v1269_v39, %v985_v38  ;;  %v3758_v39 = vld [vmem:[#allocation22_spill] sm:$0xff]  ;;  %v3759_v52 = vld [vmem:[#allocation31_spill] sm:$0xff] }
 0x240   : > { %1901 = vmatprep.mubr.msk.f32.mxu0 %vm1336_vm9, %v1302_v61  ;;  %1925 = vmatprep.mubr.msk.f32.mxu1 %vm1336_vm9, %v1318_v50  ;;  %v1173_v43 = vsel %vm1159_vm4, %v3758_v39, %v3757_v29 }
 0x242   : > { %v695_v18 = vpop.permute.xlu1 %694  ;;  %v3473_v16 = vpop.permute.xlu0 %630 }
 0x243   : > { %v1205_v35 = vsel %vm1192_vm5, %v1172_v21, %v695_v18  ;;  %v1189_v38 = vsel %vm1159_vm4, %v3759_v52, %v3473_v16 }
 0x246   : > { %v987_v37 = vpop.permute.xlu1 %986  ;;  %v727_v30 = vpop.permute.xlu0 %726 }
 0x247   : > { %v1303_v4 = vsel %vm1291_vm8, %v1270_v59, %v987_v37  ;;  %v1221_v19 = vsel %vm1192_vm5, %v1188_v60, %v727_v30 }
 0x248   : > { %1902 = vmatmul.mubr.msk.f32.gmra.mxu0 %vm1336_vm9, %v1303_v4 }
 0x24a   : > { %v697_v49 = vpop.permute.xlu1 %696  ;;  %v1019_v6 = vpop.permute.xlu0 %1018 }
 0x24b   : > { %v1319_v25 = vsel %vm1291_vm8, %v1286_v27, %v1019_v6  ;;  %v1206_v50 = vsel %vm1192_vm5, %v1173_v43, %v697_v49 }
 0x24c   : > { %1926 = vmatmul.mubr.msk.f32.gmra.mxu1 %vm1336_vm9, %v1319_v25 }
 0x24e   : > { %v793_v31 = vpop.permute.xlu1 %792  ;;  %v729_v32 = vpop.permute.xlu0 %728 }
 0x24f   : > { %v1238_v22 = vsel %vm1225_vm6, %v1205_v35, %v793_v31  ;;  %v1222_v61 = vsel %vm1192_vm5, %v1189_v38, %v729_v32  ;;  %v3764_v35 = vld [vmem:[#allocation24_spill] sm:$0xff] }
 0x252   : > { %v795_v54 = vpop.permute.xlu1 %794  ;;  %v825_v56 = vpop.permute.xlu0 %824 }
 0x253   : > { %v1254_v45 = vsel %vm1225_vm6, %v1221_v19, %v825_v56  ;;  %v1239_v18 = vsel %vm1225_vm6, %v1206_v50, %v795_v54 }
 0x255   : > { %v1888_v10 = vpop.f32.mrf.mxu0 }
 0x256   : > { %v1509_v44 = vadd.f32 %v1888_v10, %v3496_v24  ;;  %v891_v48 = vpop.permute.xlu1 %890  ;;  %v827_v23 = vpop.permute.xlu0 %826 }
 0x257   : > { %v1503_v3 = vpop.f32.mrf.mxu0  ;;  %v1271_v36 = vsel %vm1258_vm7, %v1238_v22, %v891_v48  ;;  %v1255_v1 = vsel %vm1225_vm6, %v1222_v61, %v827_v23  ;;  %v3760_v23 = vld [vmem:[#allocation41_spill] sm:$0xff] }
 0x258   : > { %1663 = vst [vmem:[%s3499_s10 + $0x8] sm:$0xff] %v1509_v44  ;;  %v1504_v51 = vadd.f32 %v3496_v24, %v1503_v3  ;;  %v3761_v3 = vld [vmem:[#allocation25_spill] sm:$0xff] }
 0x259   : > { %v1912_v46 = vpop.f32.mrf.mxu1 }
 0x25a   : > { %1662 = vst [vmem:[%s3499_s10] sm:$0xff] %v1504_v51  ;;  %v1589_v13 = vadd.f32 %v1912_v46, %v3496_v24  ;;  %v3505_v63 = vpop.permute.xlu1 %632  ;;  %v923_v7 = vpop.permute.xlu0 %922  ;;  %v1174_v51 = vsel %vm1159_vm4, %v3761_v3, %v3760_v23  ;;  %v3762_v46 = vld [vmem:[#allocation34_spill] sm:$0xff] }
 0x25b   : > { %v1583_v8 = vpop.f32.mrf.mxu1  ;;  %v1287_v11 = vsel %vm1258_vm7, %v1254_v45, %v923_v7 }
 0x25c   : > { %1679 = vst [vmem:[%s3499_s10 + $0x88] sm:$0xff] %v1589_v13  ;;  %v1584_v47 = vadd.f32 %v3496_v24, %v1583_v8  ;;  %v1190_v13 = vsel %vm1159_vm4, %v3762_v46, %v3505_v63 }
 0x25e   : > { %1678 = vst [vmem:[%s3499_s10 + $0x80] sm:$0xff] %v1584_v47  ;;  %v925_v15 = vpop.permute.xlu1 %924  ;;  %v893_v41 = vpop.permute.xlu0 %892 }
 0x25f   : > { %v1288_v62 = vsel %vm1258_vm7, %v1255_v1, %v925_v15  ;;  %v1272_v9 = vsel %vm1258_vm7, %v1239_v18, %v893_v41 }
 0x262   : > { %v1021_v53 = vpop.permute.xlu1 %1020  ;;  %v989_v55 = vpop.permute.xlu0 %988 }
 0x263   : > { %v1320_v58 = vsel %vm1291_vm8, %v1287_v11, %v1021_v53  ;;  %v1304_v42 = vsel %vm1291_vm8, %v1271_v36, %v989_v55 }
 0x264   : > { %1904 = vmatprep.mubr.msk.f32.mxu0 %vm1336_vm9, %v1304_v42  ;;  %1928 = vmatprep.mubr.msk.f32.mxu1 %vm1336_vm9, %v1320_v58 }
 0x266   : > { %v635_v14 = vpop.permute.xlu1 %634  ;;  %v603_v2 = vpop.permute.xlu0 %602 }
 0x267   : > { %v1191_v60 = vsel %vm1159_vm4, %v3763_v17, %v635_v14  ;;  %v1175_v63 = vsel %vm1159_vm4, %v3764_v35, %v603_v2 }
 0x26a   : > { %v731_v33 = vpop.permute.xlu1 %730  ;;  %v699_v57 = vpop.permute.xlu0 %698 }
 0x26b   : > { %v1223_v7 = vsel %vm1192_vm5, %v1190_v13, %v731_v33  ;;  %v1207_v8 = vsel %vm1192_vm5, %v1174_v51, %v699_v57 }
 0x26e   : > { %v1023_v0 = vpop.permute.xlu1 %1022  ;;  %v991_v40 = vpop.permute.xlu0 %990 }
 0x26f   : > { %v1321_v59 = vsel %vm1291_vm8, %v1288_v62, %v1023_v0  ;;  %v1305_v16 = vsel %vm1291_vm8, %v1272_v9, %v991_v40 }
 0x270   : > { %1905 = vmatmul.mubr.msk.f32.gmra.mxu0 %vm1336_vm9, %v1305_v16  ;;  %1929 = vmatmul.mubr.msk.f32.gmra.mxu1 %vm1336_vm9, %v1321_v59 }
 0x272   : > { %v733_v37 = vpop.permute.xlu1 %732  ;;  %v701_v30 = vpop.permute.xlu0 %700 }
 0x273   : > { %v1224_v45 = vsel %vm1192_vm5, %v1191_v60, %v733_v37  ;;  %v1208_v36 = vsel %vm1192_vm5, %v1175_v63, %v701_v30 }
 0x276   : > { %v829_v34 = vpop.permute.xlu1 %828  ;;  %v797_v26 = vpop.permute.xlu0 %796 }
 0x277   : > { %v1256_v47 = vsel %vm1225_vm6, %v1223_v7, %v829_v34  ;;  %v1240_v15 = vsel %vm1225_vm6, %v1207_v8, %v797_v26 }
 0x279   : > { %v1891_v4 = vpop.f32.mrf.mxu0 }
 0x27a   : > { %v1519_v5 = vadd.f32 %v1891_v4, %v3496_v24  ;;  %v831_v20 = vpop.permute.xlu1 %830  ;;  %v799_v27 = vpop.permute.xlu0 %798 }
 0x27b   : > { %v1513_v49 = vpop.f32.mrf.mxu0  ;;  %v1257_v11 = vsel %vm1225_vm6, %v1224_v45, %v831_v20  ;;  %v1241_v53 = vsel %vm1225_vm6, %v1208_v36, %v799_v27 }
 0x27c   : > { %1665 = vst [vmem:[%s3499_s10 + $0x18] sm:$0xff] %v1519_v5  ;;  %v1514_v6 = vadd.f32 %v3496_v24, %v1513_v49 }
 0x27d   : > { %v1915_v25 = vpop.f32.mrf.mxu1 }
 0x27e   : > { %1664 = vst [vmem:[%s3499_s10 + $0x10] sm:$0xff] %v1514_v6  ;;  %v1599_v31 = vadd.f32 %v1915_v25, %v3496_v24  ;;  %v927_v32 = vpop.permute.xlu1 %926  ;;  %v895_v54 = vpop.permute.xlu0 %894 }
 0x27f   : > { %v1593_v56 = vpop.f32.mrf.mxu1  ;;  %v1289_v41 = vsel %vm1258_vm7, %v1256_v47, %v927_v32  ;;  %v1273_v12 = vsel %vm1258_vm7, %v1240_v15, %v895_v54 }
 0x280   : > { %1681 = vst [vmem:[%s3499_s10 + $0x98] sm:$0xff] %v1599_v31  ;;  %v1594_v10 = vadd.f32 %v3496_v24, %v1593_v56 }
 0x282   : > { %1680 = vst [vmem:[%s3499_s10 + $0x90] sm:$0xff] %v1594_v10  ;;  %v929_v44 = vpop.permute.xlu1 %928  ;;  %v897_v48 = vpop.permute.xlu0 %896 }
 0x283   : > { %v1290_v55 = vsel %vm1258_vm7, %v1257_v11, %v929_v44  ;;  %v1274_v58 = vsel %vm1258_vm7, %v1241_v53, %v897_v48 }
 0x286   : > { %v1025_v28 = vpop.permute.xlu1 %1024  ;;  %v993_v21 = vpop.permute.xlu0 %992 }
 0x287   : > { %v1322_v19 = vsel %vm1291_vm8, %v1289_v41, %v1025_v28  ;;  %v1306_v22 = vsel %vm1291_vm8, %v1273_v12, %v993_v21 }
 0x288   : > { %1907 = vmatprep.mubr.msk.f32.mxu0 %vm1336_vm9, %v1306_v22  ;;  %1931 = vmatprep.mubr.msk.f32.mxu1 %vm1336_vm9, %v1322_v19 }
 0x28a   : > { %v1027_v42 = vpop.permute.xlu1 %1026  ;;  %v995_v14 = vpop.permute.xlu0 %994 }
 0x28b   : > { %v1323_v2 = vsel %vm1291_vm8, %v1290_v55, %v1027_v42  ;;  %v1307_v33 = vsel %vm1291_vm8, %v1274_v58, %v995_v14 }
 0x28c   : > { %1908 = vmatmul.mubr.msk.f32.gmra.mxu0 %vm1336_vm9, %v1307_v33  ;;  %1932 = vmatmul.mubr.msk.f32.gmra.mxu1 %vm1336_vm9, %v1323_v2 }
 0x29d   : > { %v1894_v57 = vpop.f32.mrf.mxu0 }
 0x29e   : > { %v1529_v29 = vadd.f32 %v1894_v57, %v3496_v24 }
 0x29f   : > { %v1523_v39 = vpop.f32.mrf.mxu0 }
 0x2a0   : > { %1667 = vst [vmem:[%s3499_s10 + $0x28] sm:$0xff] %v1529_v29  ;;  %v1524_v43 = vadd.f32 %v3496_v24, %v1523_v39 }
 0x2a1   : > { %v1918_v52 = vpop.f32.mrf.mxu1 }
 0x2a2   : > { %1666 = vst [vmem:[%s3499_s10 + $0x20] sm:$0xff] %v1524_v43  ;;  %v1609_v38 = vadd.f32 %v1918_v52, %v3496_v24 }
 0x2a3   : > { %v1603_v50 = vpop.f32.mrf.mxu1 }
 0x2a4   : > { %1683 = vst [vmem:[%s3499_s10 + $0xa8] sm:$0xff] %v1609_v38  ;;  %v1604_v61 = vadd.f32 %v3496_v24, %v1603_v50 }
 0x2a6   : > { %1682 = vst [vmem:[%s3499_s10 + $0xa0] sm:$0xff] %v1604_v61 }
 0x2c1   : > { %v1897_v18 = vpop.f32.mrf.mxu0 }
 0x2c2   : > { %v1539_v1 = vadd.f32 %v1897_v18, %v3496_v24 }
 0x2c3   : > { %v1533_v62 = vpop.f32.mrf.mxu0 }
 0x2c4   : > { %1669 = vst [vmem:[%s3499_s10 + $0x38] sm:$0xff] %v1539_v1  ;;  %v1534_v9 = vadd.f32 %v3496_v24, %v1533_v62 }
 0x2c5   : > { %v1921_v0 = vpop.f32.mrf.mxu1 }
 0x2c6   : > { %1668 = vst [vmem:[%s3499_s10 + $0x30] sm:$0xff] %v1534_v9  ;;  %v1619_v40 = vadd.f32 %v1921_v0, %v3496_v24 }
 0x2c7   : > { %v1613_v59 = vpop.f32.mrf.mxu1 }
 0x2c8   : > { %1685 = vst [vmem:[%s3499_s10 + $0xb8] sm:$0xff] %v1619_v40  ;;  %v1614_v16 = vadd.f32 %v3496_v24, %v1613_v59 }
 0x2ca   : > { %1684 = vst [vmem:[%s3499_s10 + $0xb0] sm:$0xff] %v1614_v16 }
 0x2e4   : > { %v1900_v37 = vpop.f32.mrf.mxu0 }
 0x2e5   : > { %v1549_v30 = vadd.f32 %v1900_v37, %v3496_v24 }
 0x2e6   : > { %v1543_v34 = vpop.f32.mrf.mxu0 }
 0x2e7   : > { %1671 = vst [vmem:[%s3499_s10 + $0x48] sm:$0xff] %v1549_v30  ;;  %v1544_v26 = vadd.f32 %v3496_v24, %v1543_v34 }
 0x2e8   : > { %v1924_v4 = vpop.f32.mrf.mxu1 }
 0x2e9   : > { %1670 = vst [vmem:[%s3499_s10 + $0x40] sm:$0xff] %v1544_v26  ;;  %v1629_v5 = vadd.f32 %v1924_v4, %v3496_v24 }
 0x2ea   : > { %v1623_v20 = vpop.f32.mrf.mxu1 }
 0x2eb   : > { %1687 = vst [vmem:[%s3499_s10 + $0xc8] sm:$0xff] %v1629_v5  ;;  %v1624_v27 = vadd.f32 %v3496_v24, %v1623_v20 }
 0x2ed   : > { %1686 = vst [vmem:[%s3499_s10 + $0xc0] sm:$0xff] %v1624_v27 }
 0x308   : > { %v1903_v49 = vpop.f32.mrf.mxu0 }
 0x309   : > { %v1559_v6 = vadd.f32 %v1903_v49, %v3496_v24 }
 0x30a   : > { %v1553_v25 = vpop.f32.mrf.mxu0 }
 0x30b   : > { %1673 = vst [vmem:[%s3499_s10 + $0x58] sm:$0xff] %v1559_v6  ;;  %v1554_v31 = vadd.f32 %v3496_v24, %v1553_v25 }
 0x30c   : > { %v1927_v32 = vpop.f32.mrf.mxu1 }
 0x30d   : > { %1672 = vst [vmem:[%s3499_s10 + $0x50] sm:$0xff] %v1554_v31  ;;  %v1639_v54 = vadd.f32 %v1927_v32, %v3496_v24 }
 0x30e   : > { %v1633_v56 = vpop.f32.mrf.mxu1 }
 0x30f   : > { %1689 = vst [vmem:[%s3499_s10 + $0xd8] sm:$0xff] %v1639_v54  ;;  %v1634_v10 = vadd.f32 %v3496_v24, %v1633_v56 }
 0x311   : > { %1688 = vst [vmem:[%s3499_s10 + $0xd0] sm:$0xff] %v1634_v10 }
 0x330   : > { %v1906_v44 = vpop.f32.mrf.mxu0  ;;  %v1930_v48 = vpop.f32.mrf.mxu1 }
 0x331   : > { %v1569_v23 = vadd.f32 %v1906_v44, %v3496_v24  ;;  %v1649_v3 = vadd.f32 %v1930_v48, %v3496_v24 }
 0x332   : > { %v1563_v51 = vpop.f32.mrf.mxu0  ;;  %v1643_v46 = vpop.f32.mrf.mxu1 }
 0x333   : > { %1675 = vst [vmem:[%s3499_s10 + $0x68] sm:$0xff] %v1569_v23  ;;  %1691 = vst [vmem:[%s3499_s10 + $0xe8] sm:$0xff] %v1649_v3  ;;  %v1564_v13 = vadd.f32 %v3496_v24, %v1563_v51  ;;  %v1644_v7 = vadd.f32 %v3496_v24, %v1643_v46 }
 0x335   : > { %1674 = vst [vmem:[%s3499_s10 + $0x60] sm:$0xff] %v1564_v13  ;;  %1690 = vst [vmem:[%s3499_s10 + $0xe0] sm:$0xff] %v1644_v7 }
 0x34c   : > { %v1909_v8 = vpop.f32.mrf.mxu0  ;;  %v1933_v47 = vpop.f32.mrf.mxu1 }
 0x34d   : > { %v1579_v15 = vadd.f32 %v1909_v8, %v3496_v24  ;;  %v1659_v41 = vadd.f32 %v1933_v47, %v3496_v24 }
 0x34e   : > { %v1573_v12 = vpop.f32.mrf.mxu0  ;;  %v1653_v28 = vpop.f32.mrf.mxu1 }
 0x34f   : > { %1677 = vst [vmem:[%s3499_s10 + $0x78] sm:$0xff] %v1579_v15  ;;  %1693 = vst [vmem:[%s3499_s10 + $0xf8] sm:$0xff] %v1659_v41  ;;  %v1574_v21 = vadd.f32 %v3496_v24, %v1573_v12  ;;  %v1654_v17 = vadd.f32 %v3496_v24, %v1653_v28 }
 0x351   : > { %1676 = vst [vmem:[%s3499_s10 + $0x70] sm:$0xff] %v1574_v21  ;;  %1692 = vst [vmem:[%s3499_s10 + $0xf0] sm:$0xff] %v1654_v17 }
 0x352   : > { %2036 = shalt.err (!%p2033_p5)
}
 0x353   : > { %s2037_s4 = scalar_lea.hbm %s3627_s23, 4096  ;;  %s2041_s7 = scalar_lea.hbm %s3688_s3, 8192 }
 0x354   : > { %p2038_p6 = scmp.ne.s32.totalorder %s3627_s23, %s2037_s4  ;;  %p2042_p10 = scmp.lt.s32.totalorder %s3627_s23, %s3688_s3 }
 0x355   : > { %p2043_p11 = scmp.lt.s32.totalorder %s2041_s7, %s2037_s4 }
 0x356   : > { %p2039_p7 = pnand %p2038_p6, %p2171_p4 }
 0x357   : > { %p2044_p12 = por %p2043_p11, %p2042_p10 }
 0x358   : > { %p2040_p9 = pneg %p2039_p7 }
 0x35a   : > { %p2045_p13 = pnand %p2044_p12, %p2040_p9 }
 0x35c   : > { %2048 = shalt.err (!%p2045_p13)
}
 0x35d   : > { %s2110_s10 = smov 128  }
 0x35e   : > { %1945 = dma.vmem_to_hbm [thread:$0]  (%p2171_p4), %s3633_s18, 4096, %s3627_s23, %s3639_s15, %s2110_s10, %s2110_s10, %s2102_s5  }
 0x35f PF: > { %p1951_p0 = scmp.ge.s32.totalorder %s2099_s17, 2  ;;  %s1725_s11 = sand.u32 1, %s2079_s12  }
 0x360   : > { %s1726_s19 = scalar_lea.sflag [#allocation3], %s1725_s11 }
 0x361   : > { %p1948_p1 = pnand %p1951_p0, %p2178_p8 }
 0x363   : > { %p1949_p2 = pneg %p1948_p1 }
 0x365   : > { %2074 = dma.done.wait (%p1949_p2), %s1726_s19, 4096  }
 0x366   : > { %2076 = vsyncadd (%p1949_p2), %s1726_s19, 4294963200  ;;  %s16_s17 = sadd.s32 1, %s2099_s17   ;;  %s3765_s12 = smov %s2083_s13 }
 0x367   : > { %p13_p3 = scmp.ge.s32.totalorder %s16_s17, 4   ;;  %s3766_s13 = smov %s2087_s14 }
 0x368   : > { %s3767_s14 = smov %s2184_s25  ;;  %s3768_s15 = smov %s2095_s16 }
 0x369   : > { %s3769_s16 = smov %s3771_s20  ;;  %15 = sbr.rel (!%p13_p3) target bundleno = 4 (0x4), region = 67 }
 0x36e   :  { %1731 = vsyncpa [#allocation3], 1 }
 0x36f   :  { %1733 = vsyncpa [#allocation3 + $0x1], 1 }

</bundles_post_ra>
